<compile_context>
chip_gen: v5e
topology: v5e:2x2
jax: 0.10.0
libtpu: 0.0.40
codegen_flags: <defaults>
</compile_context>

<pallas_src>
import math
import functools
import numpy as np
import jax
import jax.numpy as jnp
from jax import lax
from jax.experimental import pallas as pl
from jax.experimental.pallas import tpu as pltpu


# ---------------------------------------------------------------------------
# Pallas kernel
# ---------------------------------------------------------------------------
def make_mhsa_kernel(n_heads, seq_len, d_head, batch_block, aggregate):
    scale = 1.0 / math.sqrt(d_head)

    def kernel(x_ref, wq_ref, wk_ref, wv_ref, o_ref):
        # x_ref : (BB, T, Din)        block of independent batch rows
        # w*_ref: (H, Din, d_head)    per-head projection weights (x @ W layout)
        # o_ref : (BB, T, Dout)
        wq = wq_ref[...]
        wk = wk_ref[...]
        wv = wv_ref[...]

        # Causal mask from iota, hoisted once per grid step (nothing from HBM).
        t_q = lax.broadcasted_iota(jnp.int32, (n_heads, seq_len, seq_len), 1)
        t_k = lax.broadcasted_iota(jnp.int32, (n_heads, seq_len, seq_len), 2)
        causal = t_k <= t_q

        # Unrolled loop over *independent* batch rows in this block: no
        # cross-iteration dependency, amortizes the per-grid-step overhead.
        for bb in range(batch_block):
            x = x_ref[bb]                                             # (T, Din)
            xh = jnp.broadcast_to(x, (n_heads, seq_len, x.shape[-1]))  # (H, T, Din)

            # All heads' Q/K/V in one batched MXU op each.
            q = jnp.einsum('htd,hdf->htf', xh, wq,
                           preferred_element_type=jnp.float32)        # (H, T, d)
            k = jnp.einsum('htd,hdf->htf', xh, wk,
                           preferred_element_type=jnp.float32)
            v = jnp.einsum('htd,hdf->htf', xh, wv,
                           preferred_element_type=jnp.float32)

            # Head-batched T x T causal scores (flash-style einsum pattern).
            s = jnp.einsum('hqd,hkd->hqk', q, k,
                           preferred_element_type=jnp.float32) * scale
            s = jnp.where(causal, s, -1e30)

            # Numerically-stable softmax; divide goes to the EUP (approx rcp).
            m = jnp.max(s, axis=-1, keepdims=True)
            p = jnp.exp(s - m)
            p = p * pl.reciprocal(jnp.sum(p, axis=-1, keepdims=True), approx=True)

            o = jnp.einsum('hqk,hkd->hqd', p, v,
                           preferred_element_type=jnp.float32)        # (H, T, d)

            if aggregate == 'concat':
                out = jnp.concatenate([o[h] for h in range(n_heads)], axis=-1)
            else:  # 'mean'
                out = sum(o[h] for h in range(n_heads)) * (1.0 / n_heads)

            o_ref[bb] = out          # single dense (T, Dout) store, no scratch

    return kernel


# ---------------------------------------------------------------------------
# Wrapper: per-head weight split (layout plumbing) + pallas_call
# ---------------------------------------------------------------------------
@functools.partial(jax.jit,
                   static_argnames=('n_heads', 'attention_aggregate', 'batch_block'))
def masked_self_attention(x, wq, wk, wv, *, n_heads=4,
                          attention_aggregate='concat', batch_block=4):
    """MaskedSelfAttention forward.

    x        : (B, T, input_dim)
    wq/wk/wv : (input_dim, n_heads * per_head_dim) in `x @ W` layout
               (i.e. the transpose of the torch nn.Linear weight).
    """
    if attention_aggregate not in ('concat', 'mean'):
        raise ValueError(f'wrong value for aggregate {attention_aggregate}')

    b, t, d_in = x.shape
    d_head = wq.shape[1] // n_heads
    d_out = n_heads * d_head if attention_aggregate == 'concat' else d_head

    bb = math.gcd(batch_block, b)          # batch rows per grid step
    grid = (b // bb,)

    # Pre-split per-head weights in the wrapper: (Din, H*d) -> (H, Din, d).
    def split_heads(w):
        return jnp.transpose(w.reshape(d_in, n_heads, d_head), (1, 0, 2))

    wq_h, wk_h, wv_h = split_heads(wq), split_heads(wk), split_heads(wv)

    kernel = make_mhsa_kernel(n_heads, t, d_head, bb, attention_aggregate)

    flops = 2 * b * (3 * t * d_in * n_heads * d_head     # projections
                     + 2 * n_heads * t * t * d_head)     # QK^T and PV
    bytes_accessed = 4 * (x.size + 3 * wq_h.size + b * t * d_out)

    return pl.pallas_call(
        kernel,
        out_shape=jax.ShapeDtypeStruct((b, t, d_out), jnp.float32),
        grid=grid,
        in_specs=[
            pl.BlockSpec((bb, t, d_in), lambda i: (i, 0, 0)),
            pl.BlockSpec((n_heads, d_in, d_head), lambda i: (0, 0, 0)),
            pl.BlockSpec((n_heads, d_in, d_head), lambda i: (0, 0, 0)),
            pl.BlockSpec((n_heads, d_in, d_head), lambda i: (0, 0, 0)),
        ],
        out_specs=pl.BlockSpec((bb, t, d_out), lambda i: (i, 0, 0)),
        compiler_params=pltpu.CompilerParams(dimension_semantics=("parallel",)),
        cost_estimate=pl.CostEstimate(flops=flops,
                                      transcendentals=b * n_heads * t * t,
                                      bytes_accessed=bytes_accessed),
    )(x, wq_h, wk_h, wv_h)


# ---------------------------------------------------------------------------
# Pure-JAX, torch-faithful reference for validation
# ---------------------------------------------------------------------------
def reference_forward(x, wq, wk, wv, n_heads, attention_aggregate='concat'):
    b, t, _ = x.shape
    d_head = wq.shape[1] // n_heads
    q = (x @ wq).reshape(b, t, n_heads, d_head).transpose(0, 2, 1, 3)   # (B,H,T,d)
    k = (x @ wk).reshape(b, t, n_heads, d_head).transpose(0, 2, 3, 1)   # (B,H,d,T)
    v = (x @ wv).reshape(b, t, n_heads, d_head).transpose(0, 2, 1, 3)   # (B,H,T,d)
    s = jnp.matmul(q, k) / np.sqrt(d_head)
    mask = jnp.where(jnp.tril(jnp.ones((t, t))) == 0, -jnp.inf, 0.0)
    s = s + mask
    a = jax.nn.softmax(s, axis=-1)
    o = jnp.matmul(a, v)                                                # (B,H,T,d)
    if attention_aggregate == 'concat':
        return o.transpose(0, 2, 1, 3).reshape(b, t, n_heads * d_head)
    return o.transpose(0, 2, 1, 3).mean(axis=2)


# ---------------------------------------------------------------------------
if __name__ == "__main__":
    B, T = 16, 8
    INPUT_DIM, OUTPUT_DIM, N_HEADS = 32, 32, 4

    key = jax.random.PRNGKey(0)
    kx, kq, kk, kv, kq2, kk2, kv2 = jax.random.split(key, 7)
    bound = 1.0 / math.sqrt(INPUT_DIM)

    x = jax.random.normal(kx, (B, T, INPUT_DIM), jnp.float32)

    # ---- 'concat' aggregation (DNNTSP default): W* are (Din, output_dim) ------
    wq = jax.random.uniform(kq, (INPUT_DIM, OUTPUT_DIM), jnp.float32, -bound, bound)
    wk = jax.random.uniform(kk, (INPUT_DIM, OUTPUT_DIM), jnp.float32, -bound, bound)
    wv = jax.random.uniform(kv, (INPUT_DIM, OUTPUT_DIM), jnp.float32, -bound, bound)

    out = masked_self_attention(x, wq, wk, wv, n_heads=N_HEADS,
                                attention_aggregate='concat')
    out = jax.block_until_ready(out)
    assert out.shape == (B, T, OUTPUT_DIM)
    ref = reference_forward(x, wq, wk, wv, N_HEADS, 'concat')
    if not np.allclose(np.asarray(out), np.asarray(ref), rtol=5e-3, atol=5e-3):
        raise AssertionError("concat: Pallas kernel does not match reference")

    # ---- 'mean' aggregation: W* are (Din, n_heads * output_dim) ---------------
    wq_m = jax.random.uniform(kq2, (INPUT_DIM, N_HEADS * OUTPUT_DIM),
                              jnp.float32, -bound, bound)
    wk_m = jax.random.uniform(kk2, (INPUT_DIM, N_HEADS * OUTPUT_DIM),
                              jnp.float32, -bound, bound)
    wv_m = jax.random.uniform(kv2, (INPUT_DIM, N_HEADS * OUTPUT_DIM),
                              jnp.float32, -bound, bound)

    out_m = masked_self_attention(x, wq_m, wk_m, wv_m, n_heads=N_HEADS,
                                  attention_aggregate='mean')
    out_m = jax.block_until_ready(out_m)
    assert out_m.shape == (B, T, OUTPUT_DIM)
    ref_m = reference_forward(x, wq_m, wk_m, wv_m, N_HEADS, 'mean')
    if not np.allclose(np.asarray(out_m), np.asarray(ref_m), rtol=5e-3, atol=5e-3):
        raise AssertionError("mean: Pallas kernel does not match reference")

    print("KERNEL_OK")
</pallas_src>

<mosaic_0001>
module attributes {stable_mosaic.version = 11 : i64} {
  func.func @kernel(%arg0: i32, %arg1: memref<4x8x32xf32, #tpu.memory_space<vmem>>, %arg2: memref<4x32x8xf32, #tpu.memory_space<vmem>>, %arg3: memref<4x32x8xf32, #tpu.memory_space<vmem>>, %arg4: memref<4x32x8xf32, #tpu.memory_space<vmem>>, %arg5: memref<4x8x32xf32, #tpu.memory_space<vmem>>) attributes {dimension_semantics = [#tpu.dimension_semantics<parallel>], iteration_bounds = array<i64: 4>, scalar_prefetch = 0 : i64, scratch_operands = 0 : i64, tpu.core_type = #tpu.core_type<tc>, window_params = [{transform_indices = @transform_0, window_bounds = array<i64: 4, 8, 32>}, {pipeline_mode = #tpu.pipeline_mode<synchronous>, transform_indices = @transform_1, window_bounds = array<i64: 4, 32, 8>}, {pipeline_mode = #tpu.pipeline_mode<synchronous>, transform_indices = @transform_2, window_bounds = array<i64: 4, 32, 8>}, {pipeline_mode = #tpu.pipeline_mode<synchronous>, transform_indices = @transform_3, window_bounds = array<i64: 4, 32, 8>}, {transform_indices = @transform_4, window_bounds = array<i64: 4, 8, 32>}]} {
    %c0 = arith.constant 0 : index
    %c0_0 = arith.constant 0 : index
    %c0_1 = arith.constant 0 : index
    %0 = vector.load %arg2[%c0, %c0_0, %c0_1] : memref<4x32x8xf32, #tpu.memory_space<vmem>>, vector<4x32x8xf32>
    %c0_2 = arith.constant 0 : index
    %c0_3 = arith.constant 0 : index
    %c0_4 = arith.constant 0 : index
    %1 = vector.load %arg3[%c0_2, %c0_3, %c0_4] : memref<4x32x8xf32, #tpu.memory_space<vmem>>, vector<4x32x8xf32>
    %c0_5 = arith.constant 0 : index
    %c0_6 = arith.constant 0 : index
    %c0_7 = arith.constant 0 : index
    %2 = vector.load %arg4[%c0_5, %c0_6, %c0_7] : memref<4x32x8xf32, #tpu.memory_space<vmem>>, vector<4x32x8xf32>
    %3 = tpu.iota {dimensions = array<i32: 1>} : vector<4x8x8xi32>
    %4 = tpu.iota {dimensions = array<i32: 2>} : vector<4x8x8xi32>
    %5 = arith.cmpi sle, %4, %3 : vector<4x8x8xi32>
    %c0_8 = arith.constant 0 : index
    %c0_9 = arith.constant 0 : index
    %c0_10 = arith.constant 0 : index
    %6 = vector.load %arg1[%c0_8, %c0_9, %c0_10] : memref<4x8x32xf32, #tpu.memory_space<vmem>>, vector<1x8x32xf32>
    %7 = vector.shape_cast %6 : vector<1x8x32xf32> to vector<8x32xf32>
    %8 = vector.shape_cast %7 : vector<8x32xf32> to vector<1x8x32xf32>
    %9 = vector.broadcast %8 : vector<1x8x32xf32> to vector<4x8x32xf32>
    "tpu.trace_start"() <{level = 10 : i32, message = "htd,hdf->htf"}> : () -> ()
    %cst = arith.constant dense<0.000000e+00> : vector<4x8x8xf32>
    %10 = tpu.matmul %9, %0, %cst {dimension_numbers = #tpu.dot_dimension_numbers<[2], [1], [1], [2], [0, 0, 0, 1, 1, 2], [0], [0]>} : vector<4x8x32xf32>, vector<4x32x8xf32>, vector<4x8x8xf32> -> vector<4x8x8xf32>
    %cst_11 = arith.constant dense<0.000000e+00> : vector<4x8x8xf32>
    %11 = tpu.matmul %9, %1, %cst_11 {dimension_numbers = #tpu.dot_dimension_numbers<[2], [1], [1], [2], [0, 0, 0, 1, 1, 2], [0], [0]>} : vector<4x8x32xf32>, vector<4x32x8xf32>, vector<4x8x8xf32> -> vector<4x8x8xf32>
    %cst_12 = arith.constant dense<0.000000e+00> : vector<4x8x8xf32>
    %12 = tpu.matmul %9, %2, %cst_12 {dimension_numbers = #tpu.dot_dimension_numbers<[2], [1], [1], [2], [0, 0, 0, 1, 1, 2], [0], [0]>} : vector<4x8x32xf32>, vector<4x32x8xf32>, vector<4x8x8xf32> -> vector<4x8x8xf32>
    "tpu.trace_stop"() : () -> ()
    "tpu.trace_start"() <{level = 10 : i32, message = "hqd,hkd->hqk"}> : () -> ()
    %cst_13 = arith.constant dense<0.000000e+00> : vector<4x8x8xf32>
    %13 = tpu.matmul %10, %11, %cst_13 {dimension_numbers = #tpu.dot_dimension_numbers<[2], [2], [1], [1], [0, 0, 0, 1, 1, 1], [0], [0]>} : vector<4x8x8xf32>, vector<4x8x8xf32>, vector<4x8x8xf32> -> vector<4x8x8xf32>
    "tpu.trace_stop"() : () -> ()
    %cst_14 = arith.constant 0.353553385 : f32
    %14 = vector.broadcast %cst_14 : f32 to vector<4x8x8xf32>
    %15 = arith.mulf %13, %14 : vector<4x8x8xf32>
    %cst_15 = arith.constant -1.000000e+30 : f32
    %16 = vector.broadcast %cst_15 : f32 to vector<4x8x8xf32>
    %17 = arith.select %5, %15, %16 : vector<4x8x8xi1>, vector<4x8x8xf32>
    %cst_16 = arith.constant dense<0xFF800000> : vector<4x8xf32>
    %18 = vector.multi_reduction <maximumf>, %17, %cst_16 [2] : vector<4x8x8xf32> to vector<4x8xf32>
    %19 = vector.shape_cast %18 : vector<4x8xf32> to vector<4x8x1xf32>
    %20 = vector.broadcast %19 : vector<4x8x1xf32> to vector<4x8x8xf32>
    %21 = arith.subf %17, %20 : vector<4x8x8xf32>
    %22 = math.exp %21 : vector<4x8x8xf32>
    %cst_17 = arith.constant dense<0.000000e+00> : vector<4x8xf32>
    %23 = vector.multi_reduction <add>, %22, %cst_17 [2] : vector<4x8x8xf32> to vector<4x8xf32>
    %24 = vector.shape_cast %23 : vector<4x8xf32> to vector<4x8x1xf32>
    %25 = tpu.reciprocal %24 {approx = true} : vector<4x8x1xf32> -> vector<4x8x1xf32>
    %26 = vector.broadcast %25 : vector<4x8x1xf32> to vector<4x8x8xf32>
    %27 = arith.mulf %22, %26 : vector<4x8x8xf32>
    "tpu.trace_start"() <{level = 10 : i32, message = "hqk,hkd->hqd"}> : () -> ()
    %cst_18 = arith.constant dense<0.000000e+00> : vector<4x8x8xf32>
    %28 = tpu.matmul %27, %12, %cst_18 {dimension_numbers = #tpu.dot_dimension_numbers<[2], [1], [1], [2], [0, 0, 0, 1, 1, 2], [0], [0]>} : vector<4x8x8xf32>, vector<4x8x8xf32>, vector<4x8x8xf32> -> vector<4x8x8xf32>
    "tpu.trace_stop"() : () -> ()
    %29 = vector.extract_strided_slice %28 {offsets = [0, 0, 0], sizes = [1, 8, 8], strides = [1, 1, 1]} : vector<4x8x8xf32> to vector<1x8x8xf32>
    %30 = vector.shape_cast %29 : vector<1x8x8xf32> to vector<8x8xf32>
    %31 = vector.extract_strided_slice %28 {offsets = [1, 0, 0], sizes = [1, 8, 8], strides = [1, 1, 1]} : vector<4x8x8xf32> to vector<1x8x8xf32>
    %32 = vector.shape_cast %31 : vector<1x8x8xf32> to vector<8x8xf32>
    %33 = vector.extract_strided_slice %28 {offsets = [2, 0, 0], sizes = [1, 8, 8], strides = [1, 1, 1]} : vector<4x8x8xf32> to vector<1x8x8xf32>
    %34 = vector.shape_cast %33 : vector<1x8x8xf32> to vector<8x8xf32>
    %35 = vector.extract_strided_slice %28 {offsets = [3, 0, 0], sizes = [1, 8, 8], strides = [1, 1, 1]} : vector<4x8x8xf32> to vector<1x8x8xf32>
    %36 = vector.shape_cast %35 : vector<1x8x8xf32> to vector<8x8xf32>
    %37 = tpu.concatenate %30, %32, %34, %36 in 1 : vector<8x8xf32>, vector<8x8xf32>, vector<8x8xf32>, vector<8x8xf32> -> vector<8x32xf32>
    %c0_19 = arith.constant 0 : index
    %c0_20 = arith.constant 0 : index
    %c0_21 = arith.constant 0 : index
    %38 = vector.load %arg5[%c0_19, %c0_20, %c0_21] : memref<4x8x32xf32, #tpu.memory_space<vmem>>, vector<1x8x32xf32>
    %39 = vector.shape_cast %38 : vector<1x8x32xf32> to vector<8x32xf32>
    %40 = vector.shape_cast %37 : vector<8x32xf32> to vector<1x8x32xf32>
    tpu.vector_store %arg5[%c0_19, %c0_20, %c0_21], %40 {strides = array<i32>} : memref<4x8x32xf32, #tpu.memory_space<vmem>>, vector<1x8x32xf32>,
    %c1 = arith.constant 1 : index
    %c0_22 = arith.constant 0 : index
    %c0_23 = arith.constant 0 : index
    %41 = vector.load %arg1[%c1, %c0_22, %c0_23] : memref<4x8x32xf32, #tpu.memory_space<vmem>>, vector<1x8x32xf32>
    %42 = vector.shape_cast %41 : vector<1x8x32xf32> to vector<8x32xf32>
    %43 = vector.shape_cast %42 : vector<8x32xf32> to vector<1x8x32xf32>
    %44 = vector.broadcast %43 : vector<1x8x32xf32> to vector<4x8x32xf32>
    "tpu.trace_start"() <{level = 10 : i32, message = "htd,hdf->htf"}> : () -> ()
    %cst_24 = arith.constant dense<0.000000e+00> : vector<4x8x8xf32>
    %45 = tpu.matmul %44, %0, %cst_24 {dimension_numbers = #tpu.dot_dimension_numbers<[2], [1], [1], [2], [0, 0, 0, 1, 1, 2], [0], [0]>} : vector<4x8x32xf32>, vector<4x32x8xf32>, vector<4x8x8xf32> -> vector<4x8x8xf32>
    %cst_25 = arith.constant dense<0.000000e+00> : vector<4x8x8xf32>
    %46 = tpu.matmul %44, %1, %cst_25 {dimension_numbers = #tpu.dot_dimension_numbers<[2], [1], [1], [2], [0, 0, 0, 1, 1, 2], [0], [0]>} : vector<4x8x32xf32>, vector<4x32x8xf32>, vector<4x8x8xf32> -> vector<4x8x8xf32>
    %cst_26 = arith.constant dense<0.000000e+00> : vector<4x8x8xf32>
    %47 = tpu.matmul %44, %2, %cst_26 {dimension_numbers = #tpu.dot_dimension_numbers<[2], [1], [1], [2], [0, 0, 0, 1, 1, 2], [0], [0]>} : vector<4x8x32xf32>, vector<4x32x8xf32>, vector<4x8x8xf32> -> vector<4x8x8xf32>
    "tpu.trace_stop"() : () -> ()
    "tpu.trace_start"() <{level = 10 : i32, message = "hqd,hkd->hqk"}> : () -> ()
    %cst_27 = arith.constant dense<0.000000e+00> : vector<4x8x8xf32>
    %48 = tpu.matmul %45, %46, %cst_27 {dimension_numbers = #tpu.dot_dimension_numbers<[2], [2], [1], [1], [0, 0, 0, 1, 1, 1], [0], [0]>} : vector<4x8x8xf32>, vector<4x8x8xf32>, vector<4x8x8xf32> -> vector<4x8x8xf32>
    "tpu.trace_stop"() : () -> ()
    %cst_28 = arith.constant 0.353553385 : f32
    %49 = vector.broadcast %cst_28 : f32 to vector<4x8x8xf32>
    %50 = arith.mulf %48, %49 : vector<4x8x8xf32>
    %cst_29 = arith.constant -1.000000e+30 : f32
    %51 = vector.broadcast %cst_29 : f32 to vector<4x8x8xf32>
    %52 = arith.select %5, %50, %51 : vector<4x8x8xi1>, vector<4x8x8xf32>
    %cst_30 = arith.constant dense<0xFF800000> : vector<4x8xf32>
    %53 = vector.multi_reduction <maximumf>, %52, %cst_30 [2] : vector<4x8x8xf32> to vector<4x8xf32>
    %54 = vector.shape_cast %53 : vector<4x8xf32> to vector<4x8x1xf32>
    %55 = vector.broadcast %54 : vector<4x8x1xf32> to vector<4x8x8xf32>
    %56 = arith.subf %52, %55 : vector<4x8x8xf32>
    %57 = math.exp %56 : vector<4x8x8xf32>
    %cst_31 = arith.constant dense<0.000000e+00> : vector<4x8xf32>
    %58 = vector.multi_reduction <add>, %57, %cst_31 [2] : vector<4x8x8xf32> to vector<4x8xf32>
    %59 = vector.shape_cast %58 : vector<4x8xf32> to vector<4x8x1xf32>
    %60 = tpu.reciprocal %59 {approx = true} : vector<4x8x1xf32> -> vector<4x8x1xf32>
    %61 = vector.broadcast %60 : vector<4x8x1xf32> to vector<4x8x8xf32>
    %62 = arith.mulf %57, %61 : vector<4x8x8xf32>
    "tpu.trace_start"() <{level = 10 : i32, message = "hqk,hkd->hqd"}> : () -> ()
    %cst_32 = arith.constant dense<0.000000e+00> : vector<4x8x8xf32>
    %63 = tpu.matmul %62, %47, %cst_32 {dimension_numbers = #tpu.dot_dimension_numbers<[2], [1], [1], [2], [0, 0, 0, 1, 1, 2], [0], [0]>} : vector<4x8x8xf32>, vector<4x8x8xf32>, vector<4x8x8xf32> -> vector<4x8x8xf32>
    "tpu.trace_stop"() : () -> ()
    %64 = vector.extract_strided_slice %63 {offsets = [0, 0, 0], sizes = [1, 8, 8], strides = [1, 1, 1]} : vector<4x8x8xf32> to vector<1x8x8xf32>
    %65 = vector.shape_cast %64 : vector<1x8x8xf32> to vector<8x8xf32>
    %66 = vector.extract_strided_slice %63 {offsets = [1, 0, 0], sizes = [1, 8, 8], strides = [1, 1, 1]} : vector<4x8x8xf32> to vector<1x8x8xf32>
    %67 = vector.shape_cast %66 : vector<1x8x8xf32> to vector<8x8xf32>
    %68 = vector.extract_strided_slice %63 {offsets = [2, 0, 0], sizes = [1, 8, 8], strides = [1, 1, 1]} : vector<4x8x8xf32> to vector<1x8x8xf32>
    %69 = vector.shape_cast %68 : vector<1x8x8xf32> to vector<8x8xf32>
    %70 = vector.extract_strided_slice %63 {offsets = [3, 0, 0], sizes = [1, 8, 8], strides = [1, 1, 1]} : vector<4x8x8xf32> to vector<1x8x8xf32>
    %71 = vector.shape_cast %70 : vector<1x8x8xf32> to vector<8x8xf32>
    %72 = tpu.concatenate %65, %67, %69, %71 in 1 : vector<8x8xf32>, vector<8x8xf32>, vector<8x8xf32>, vector<8x8xf32> -> vector<8x32xf32>
    %c1_33 = arith.constant 1 : index
    %c0_34 = arith.constant 0 : index
    %c0_35 = arith.constant 0 : index
    %73 = vector.load %arg5[%c1_33, %c0_34, %c0_35] : memref<4x8x32xf32, #tpu.memory_space<vmem>>, vector<1x8x32xf32>
    %74 = vector.shape_cast %73 : vector<1x8x32xf32> to vector<8x32xf32>
    %75 = vector.shape_cast %72 : vector<8x32xf32> to vector<1x8x32xf32>
    tpu.vector_store %arg5[%c1_33, %c0_34, %c0_35], %75 {strides = array<i32>} : memref<4x8x32xf32, #tpu.memory_space<vmem>>, vector<1x8x32xf32>,
    %c2 = arith.constant 2 : index
    %c0_36 = arith.constant 0 : index
    %c0_37 = arith.constant 0 : index
    %76 = vector.load %arg1[%c2, %c0_36, %c0_37] : memref<4x8x32xf32, #tpu.memory_space<vmem>>, vector<1x8x32xf32>
    %77 = vector.shape_cast %76 : vector<1x8x32xf32> to vector<8x32xf32>
    %78 = vector.shape_cast %77 : vector<8x32xf32> to vector<1x8x32xf32>
    %79 = vector.broadcast %78 : vector<1x8x32xf32> to vector<4x8x32xf32>
    "tpu.trace_start"() <{level = 10 : i32, message = "htd,hdf->htf"}> : () -> ()
    %cst_38 = arith.constant dense<0.000000e+00> : vector<4x8x8xf32>
    %80 = tpu.matmul %79, %0, %cst_38 {dimension_numbers = #tpu.dot_dimension_numbers<[2], [1], [1], [2], [0, 0, 0, 1, 1, 2], [0], [0]>} : vector<4x8x32xf32>, vector<4x32x8xf32>, vector<4x8x8xf32> -> vector<4x8x8xf32>
    %cst_39 = arith.constant dense<0.000000e+00> : vector<4x8x8xf32>
    %81 = tpu.matmul %79, %1, %cst_39 {dimension_numbers = #tpu.dot_dimension_numbers<[2], [1], [1], [2], [0, 0, 0, 1, 1, 2], [0], [0]>} : vector<4x8x32xf32>, vector<4x32x8xf32>, vector<4x8x8xf32> -> vector<4x8x8xf32>
    %cst_40 = arith.constant dense<0.000000e+00> : vector<4x8x8xf32>
    %82 = tpu.matmul %79, %2, %cst_40 {dimension_numbers = #tpu.dot_dimension_numbers<[2], [1], [1], [2], [0, 0, 0, 1, 1, 2], [0], [0]>} : vector<4x8x32xf32>, vector<4x32x8xf32>, vector<4x8x8xf32> -> vector<4x8x8xf32>
    "tpu.trace_stop"() : () -> ()
    "tpu.trace_start"() <{level = 10 : i32, message = "hqd,hkd->hqk"}> : () -> ()
    %cst_41 = arith.constant dense<0.000000e+00> : vector<4x8x8xf32>
    %83 = tpu.matmul %80, %81, %cst_41 {dimension_numbers = #tpu.dot_dimension_numbers<[2], [2], [1], [1], [0, 0, 0, 1, 1, 1], [0], [0]>} : vector<4x8x8xf32>, vector<4x8x8xf32>, vector<4x8x8xf32> -> vector<4x8x8xf32>
    "tpu.trace_stop"() : () -> ()
    %cst_42 = arith.constant 0.353553385 : f32
    %84 = vector.broadcast %cst_42 : f32 to vector<4x8x8xf32>
    %85 = arith.mulf %83, %84 : vector<4x8x8xf32>
    %cst_43 = arith.constant -1.000000e+30 : f32
    %86 = vector.broadcast %cst_43 : f32 to vector<4x8x8xf32>
    %87 = arith.select %5, %85, %86 : vector<4x8x8xi1>, vector<4x8x8xf32>
    %cst_44 = arith.constant dense<0xFF800000> : vector<4x8xf32>
    %88 = vector.multi_reduction <maximumf>, %87, %cst_44 [2] : vector<4x8x8xf32> to vector<4x8xf32>
    %89 = vector.shape_cast %88 : vector<4x8xf32> to vector<4x8x1xf32>
    %90 = vector.broadcast %89 : vector<4x8x1xf32> to vector<4x8x8xf32>
    %91 = arith.subf %87, %90 : vector<4x8x8xf32>
    %92 = math.exp %91 : vector<4x8x8xf32>
    %cst_45 = arith.constant dense<0.000000e+00> : vector<4x8xf32>
    %93 = vector.multi_reduction <add>, %92, %cst_45 [2] : vector<4x8x8xf32> to vector<4x8xf32>
    %94 = vector.shape_cast %93 : vector<4x8xf32> to vector<4x8x1xf32>
    %95 = tpu.reciprocal %94 {approx = true} : vector<4x8x1xf32> -> vector<4x8x1xf32>
    %96 = vector.broadcast %95 : vector<4x8x1xf32> to vector<4x8x8xf32>
    %97 = arith.mulf %92, %96 : vector<4x8x8xf32>
    "tpu.trace_start"() <{level = 10 : i32, message = "hqk,hkd->hqd"}> : () -> ()
    %cst_46 = arith.constant dense<0.000000e+00> : vector<4x8x8xf32>
    %98 = tpu.matmul %97, %82, %cst_46 {dimension_numbers = #tpu.dot_dimension_numbers<[2], [1], [1], [2], [0, 0, 0, 1, 1, 2], [0], [0]>} : vector<4x8x8xf32>, vector<4x8x8xf32>, vector<4x8x8xf32> -> vector<4x8x8xf32>
    "tpu.trace_stop"() : () -> ()
    %99 = vector.extract_strided_slice %98 {offsets = [0, 0, 0], sizes = [1, 8, 8], strides = [1, 1, 1]} : vector<4x8x8xf32> to vector<1x8x8xf32>
    %100 = vector.shape_cast %99 : vector<1x8x8xf32> to vector<8x8xf32>
    %101 = vector.extract_strided_slice %98 {offsets = [1, 0, 0], sizes = [1, 8, 8], strides = [1, 1, 1]} : vector<4x8x8xf32> to vector<1x8x8xf32>
    %102 = vector.shape_cast %101 : vector<1x8x8xf32> to vector<8x8xf32>
    %103 = vector.extract_strided_slice %98 {offsets = [2, 0, 0], sizes = [1, 8, 8], strides = [1, 1, 1]} : vector<4x8x8xf32> to vector<1x8x8xf32>
    %104 = vector.shape_cast %103 : vector<1x8x8xf32> to vector<8x8xf32>
    %105 = vector.extract_strided_slice %98 {offsets = [3, 0, 0], sizes = [1, 8, 8], strides = [1, 1, 1]} : vector<4x8x8xf32> to vector<1x8x8xf32>
    %106 = vector.shape_cast %105 : vector<1x8x8xf32> to vector<8x8xf32>
    %107 = tpu.concatenate %100, %102, %104, %106 in 1 : vector<8x8xf32>, vector<8x8xf32>, vector<8x8xf32>, vector<8x8xf32> -> vector<8x32xf32>
    %c2_47 = arith.constant 2 : index
    %c0_48 = arith.constant 0 : index
    %c0_49 = arith.constant 0 : index
    %108 = vector.load %arg5[%c2_47, %c0_48, %c0_49] : memref<4x8x32xf32, #tpu.memory_space<vmem>>, vector<1x8x32xf32>
    %109 = vector.shape_cast %108 : vector<1x8x32xf32> to vector<8x32xf32>
    %110 = vector.shape_cast %107 : vector<8x32xf32> to vector<1x8x32xf32>
    tpu.vector_store %arg5[%c2_47, %c0_48, %c0_49], %110 {strides = array<i32>} : memref<4x8x32xf32, #tpu.memory_space<vmem>>, vector<1x8x32xf32>,
    %c3 = arith.constant 3 : index
    %c0_50 = arith.constant 0 : index
    %c0_51 = arith.constant 0 : index
    %111 = vector.load %arg1[%c3, %c0_50, %c0_51] : memref<4x8x32xf32, #tpu.memory_space<vmem>>, vector<1x8x32xf32>
    %112 = vector.shape_cast %111 : vector<1x8x32xf32> to vector<8x32xf32>
    %113 = vector.shape_cast %112 : vector<8x32xf32> to vector<1x8x32xf32>
    %114 = vector.broadcast %113 : vector<1x8x32xf32> to vector<4x8x32xf32>
    "tpu.trace_start"() <{level = 10 : i32, message = "htd,hdf->htf"}> : () -> ()
    %cst_52 = arith.constant dense<0.000000e+00> : vector<4x8x8xf32>
    %115 = tpu.matmul %114, %0, %cst_52 {dimension_numbers = #tpu.dot_dimension_numbers<[2], [1], [1], [2], [0, 0, 0, 1, 1, 2], [0], [0]>} : vector<4x8x32xf32>, vector<4x32x8xf32>, vector<4x8x8xf32> -> vector<4x8x8xf32>
    %cst_53 = arith.constant dense<0.000000e+00> : vector<4x8x8xf32>
    %116 = tpu.matmul %114, %1, %cst_53 {dimension_numbers = #tpu.dot_dimension_numbers<[2], [1], [1], [2], [0, 0, 0, 1, 1, 2], [0], [0]>} : vector<4x8x32xf32>, vector<4x32x8xf32>, vector<4x8x8xf32> -> vector<4x8x8xf32>
    %cst_54 = arith.constant dense<0.000000e+00> : vector<4x8x8xf32>
    %117 = tpu.matmul %114, %2, %cst_54 {dimension_numbers = #tpu.dot_dimension_numbers<[2], [1], [1], [2], [0, 0, 0, 1, 1, 2], [0], [0]>} : vector<4x8x32xf32>, vector<4x32x8xf32>, vector<4x8x8xf32> -> vector<4x8x8xf32>
    "tpu.trace_stop"() : () -> ()
    "tpu.trace_start"() <{level = 10 : i32, message = "hqd,hkd->hqk"}> : () -> ()
    %cst_55 = arith.constant dense<0.000000e+00> : vector<4x8x8xf32>
    %118 = tpu.matmul %115, %116, %cst_55 {dimension_numbers = #tpu.dot_dimension_numbers<[2], [2], [1], [1], [0, 0, 0, 1, 1, 1], [0], [0]>} : vector<4x8x8xf32>, vector<4x8x8xf32>, vector<4x8x8xf32> -> vector<4x8x8xf32>
    "tpu.trace_stop"() : () -> ()
    %cst_56 = arith.constant 0.353553385 : f32
    %119 = vector.broadcast %cst_56 : f32 to vector<4x8x8xf32>
    %120 = arith.mulf %118, %119 : vector<4x8x8xf32>
    %cst_57 = arith.constant -1.000000e+30 : f32
    %121 = vector.broadcast %cst_57 : f32 to vector<4x8x8xf32>
    %122 = arith.select %5, %120, %121 : vector<4x8x8xi1>, vector<4x8x8xf32>
    %cst_58 = arith.constant dense<0xFF800000> : vector<4x8xf32>
    %123 = vector.multi_reduction <maximumf>, %122, %cst_58 [2] : vector<4x8x8xf32> to vector<4x8xf32>
    %124 = vector.shape_cast %123 : vector<4x8xf32> to vector<4x8x1xf32>
    %125 = vector.broadcast %124 : vector<4x8x1xf32> to vector<4x8x8xf32>
    %126 = arith.subf %122, %125 : vector<4x8x8xf32>
    %127 = math.exp %126 : vector<4x8x8xf32>
    %cst_59 = arith.constant dense<0.000000e+00> : vector<4x8xf32>
    %128 = vector.multi_reduction <add>, %127, %cst_59 [2] : vector<4x8x8xf32> to vector<4x8xf32>
    %129 = vector.shape_cast %128 : vector<4x8xf32> to vector<4x8x1xf32>
    %130 = tpu.reciprocal %129 {approx = true} : vector<4x8x1xf32> -> vector<4x8x1xf32>
    %131 = vector.broadcast %130 : vector<4x8x1xf32> to vector<4x8x8xf32>
    %132 = arith.mulf %127, %131 : vector<4x8x8xf32>
    "tpu.trace_start"() <{level = 10 : i32, message = "hqk,hkd->hqd"}> : () -> ()
    %cst_60 = arith.constant dense<0.000000e+00> : vector<4x8x8xf32>
    %133 = tpu.matmul %132, %117, %cst_60 {dimension_numbers = #tpu.dot_dimension_numbers<[2], [1], [1], [2], [0, 0, 0, 1, 1, 2], [0], [0]>} : vector<4x8x8xf32>, vector<4x8x8xf32>, vector<4x8x8xf32> -> vector<4x8x8xf32>
    "tpu.trace_stop"() : () -> ()
    %134 = vector.extract_strided_slice %133 {offsets = [0, 0, 0], sizes = [1, 8, 8], strides = [1, 1, 1]} : vector<4x8x8xf32> to vector<1x8x8xf32>
    %135 = vector.shape_cast %134 : vector<1x8x8xf32> to vector<8x8xf32>
    %136 = vector.extract_strided_slice %133 {offsets = [1, 0, 0], sizes = [1, 8, 8], strides = [1, 1, 1]} : vector<4x8x8xf32> to vector<1x8x8xf32>
    %137 = vector.shape_cast %136 : vector<1x8x8xf32> to vector<8x8xf32>
    %138 = vector.extract_strided_slice %133 {offsets = [2, 0, 0], sizes = [1, 8, 8], strides = [1, 1, 1]} : vector<4x8x8xf32> to vector<1x8x8xf32>
    %139 = vector.shape_cast %138 : vector<1x8x8xf32> to vector<8x8xf32>
    %140 = vector.extract_strided_slice %133 {offsets = [3, 0, 0], sizes = [1, 8, 8], strides = [1, 1, 1]} : vector<4x8x8xf32> to vector<1x8x8xf32>
    %141 = vector.shape_cast %140 : vector<1x8x8xf32> to vector<8x8xf32>
    %142 = tpu.concatenate %135, %137, %139, %141 in 1 : vector<8x8xf32>, vector<8x8xf32>, vector<8x8xf32>, vector<8x8xf32> -> vector<8x32xf32>
    %c3_61 = arith.constant 3 : index
    %c0_62 = arith.constant 0 : index
    %c0_63 = arith.constant 0 : index
    %143 = vector.load %arg5[%c3_61, %c0_62, %c0_63] : memref<4x8x32xf32, #tpu.memory_space<vmem>>, vector<1x8x32xf32>
    %144 = vector.shape_cast %143 : vector<1x8x32xf32> to vector<8x32xf32>
    %145 = vector.shape_cast %142 : vector<8x32xf32> to vector<1x8x32xf32>
    tpu.vector_store %arg5[%c3_61, %c0_62, %c0_63], %145 {strides = array<i32>} : memref<4x8x32xf32, #tpu.memory_space<vmem>>, vector<1x8x32xf32>,
    return
  }
  func.func @transform_0(%arg0: i32) -> (i32, i32, i32) {
    %c0_i32 = arith.constant 0 : i32
    %c0_i32_0 = arith.constant 0 : i32
    %c0_i32_1 = arith.constant 0 : i32
    return %arg0, %c0_i32, %c0_i32_0 : i32, i32, i32
  }
  func.func @transform_1(%arg0: i32) -> (i32, i32, i32) {
    %c0_i32 = arith.constant 0 : i32
    %c0_i32_0 = arith.constant 0 : i32
    %c0_i32_1 = arith.constant 0 : i32
    %c0_i32_2 = arith.constant 0 : i32
    return %c0_i32, %c0_i32_0, %c0_i32_1 : i32, i32, i32
  }
  func.func @transform_2(%arg0: i32) -> (i32, i32, i32) {
    %c0_i32 = arith.constant 0 : i32
    %c0_i32_0 = arith.constant 0 : i32
    %c0_i32_1 = arith.constant 0 : i32
    %c0_i32_2 = arith.constant 0 : i32
    return %c0_i32, %c0_i32_0, %c0_i32_1 : i32, i32, i32
  }
  func.func @transform_3(%arg0: i32) -> (i32, i32, i32) {
    %c0_i32 = arith.constant 0 : i32
    %c0_i32_0 = arith.constant 0 : i32
    %c0_i32_1 = arith.constant 0 : i32
    %c0_i32_2 = arith.constant 0 : i32
    return %c0_i32, %c0_i32_0, %c0_i32_1 : i32, i32, i32
  }
  func.func @transform_4(%arg0: i32) -> (i32, i32, i32) {
    %c0_i32 = arith.constant 0 : i32
    %c0_i32_0 = arith.constant 0 : i32
    %c0_i32_1 = arith.constant 0 : i32
    return %arg0, %c0_i32, %c0_i32_0 : i32, i32, i32
  }
}

</mosaic_0001>

<bundles_post_ra>
// kernel: masked_self_attention.1
= control target key start
LH: loop header
LB: loop body
LE: loop exit
PB: predicated region body
PF: predicated region fallthrough
CT: control target
= control target key end

     0   :  { %9 = vsyncpa [#allocation3], 0  ;;  %s3497_s0 = inlined_call_operand.vmem [shape: f32[16,8,32], index: 0, kind: input, shape index: {}]   ;;  %s3498_s1 = inlined_call_operand.vmem [shape: f32[4,32,8], index: 1, kind: input, shape index: {}]   ;;  %s3499_s2 = inlined_call_operand.vmem [shape: f32[4,32,8], index: 2, kind: input, shape index: {}]   ;;  %s3500_s3 = inlined_call_operand.vmem [shape: f32[4,32,8], index: 3, kind: input, shape index: {}]   ;;  %s3501_s4 = inlined_call_operand.hbm [shape: f32[16,8,32], index: 4, kind: output, shape index: {}]  }
   0x1   :  { %11 = vsyncpa [#allocation3 + $0x1], 0  ;;  %s2689_s15 = smov 0   ;;  %s2691_s16 = smov 0  }
   0x2   :  { %s2693_s17 = smov 0   ;;  %s2695_s18 = smov 0  }
   0x3 LB: > { %s2710_s19 = sadd.s32 4294967295, %s2658_s18   ;;  %s2372_s20 = sadd.s32 4294967294, %s2658_s18   ;;  %s2658_s18 = sphi %s2695_s18, %s3525_s18   ;;  %s2654_s17 = sphi %s2693_s17, %s3524_s17   ;;  %s2650_s16 = sphi %s2691_s16, %s3523_s16   ;;  %s2646_s15 = sphi %s2689_s15, %s3522_s15  }
   0x4   : > { %s2714_s21 = sadd.s32 1, %s2658_s18   ;;  %s113_s22 = sadd.s32 1, %s2654_s17 }
   0x5   : > { %s110_s23 = ssub.s32 %s2658_s18, %s2714_s21  ;;  %p123_p0 = scmp.ne.s32.totalorder %s2654_s17, %s2650_s16 }
   0x6   : > { %p111_p1 = scmp.eq.s32.totalorder %s110_s23, 0  ;;  %p124_p2 = scmp.eq.s32.totalorder %s2710_s19, 3 }
   0x7   : > { %p129_p3 = scmp.ne.s32.totalorder %s2650_s16, %s2646_s15  ;;  %p130_p4 = scmp.eq.s32.totalorder %s2372_s20, 3 }
   0x8   : > { %s2725_s24 = scalar_select %p111_p1, %s2654_s17, %s113_s22  }
   0x9   : > { %p2727_p5 = por %p124_p2, %p123_p0  ;;  %p2731_p6 = por %p130_p4, %p129_p3 }
   0xa   : > { %p2375_p7 = scmp.ge.s32.totalorder %s2658_s18, 1  ;;  %p166_p8 = scmp.lt.s32.totalorder %s2658_s18, 5 }
   0xc   : > { %p167_p9 = pnand %p2375_p7, %p166_p8 }
   0xe   : > { %170 = sbr.rel (%p167_p9) target bundleno = 2433 (0x981), region = 36 }
  0x13   : > { %v2740_v0 = vld [vmem:[%s3498_s1 + $0x38] sm:$0xff]  ;;  %v2750_v2 = vld [vmem:[%s3498_s1 + $0x30] sm:$0xff]  ;;  %s2377_s7 = sshll.u32 %s2710_s19, 2  ;;  %v2763_v4 = vld [vmem:[%s3498_s1 + $0x28] sm:$0xff]  ;;  %vm253_vm0 = vcmask 261120   ;;  %vm497_vm1 = vcmask 64512   ;;  %v247_v59 = vlaneseq }
  0x14   : > { %v2745_v1 = vld [vmem:[%s3498_s1 + $0x58] sm:$0xff]  ;;  %289 = vmatpush.msra.mxu1 %v2740_v0  ;;  %v2758_v3 = vld [vmem:[%s3498_s1 + $0x50] sm:$0xff]  ;;  %p193_p10 = scmp.lt.s32.totalorder %s2377_s7, 15  ;;  %v2768_v5 = vld [vmem:[%s3498_s1 + $0x48] sm:$0xff]  ;;  %s2660_s8 = smov 16   ;;  %vm759_vm3 = vcmask 130048  }
  0x15   : > { %309 = vmatpush.msra.mxu2 %v2745_v1  ;;  %v2773_v6 = vld [vmem:[%s3498_s1 + $0x78] sm:$0xff]  ;;  %v2780_v7 = vld [vmem:[%s3498_s1 + $0x70] sm:$0xff]  ;;  %v2785_v8 = vld [vmem:[%s3498_s1 + $0x20] sm:$0xff]  ;;  %v248_v61 = vshrl.u32 %v247_v59, 7  ;;  %v250_v62 = vand.u32 127, %v247_v59  ;;  %s2661_s10 = smov 8  }
  0x16   : > { %290 = vmatpush.msra.mxu1 %v2750_v2  ;;  %s3527_s7 = smov (!%p193_p10, %s2377_s7), 15  ;;  %v2790_v9 = vld [vmem:[%s3498_s1 + $0x40] sm:$0xff]  ;;  %329 = vmatpush.msra.mxu3 %v2773_v6  ;;  %v2803_v10 = vld [vmem:[%s3499_s2 + $0x38] sm:$0xff]  ;;  %v2819_v13 = vld [vmem:[%s3498_s1 + $0x68] sm:$0xff]  ;;  %s2662_s11 = smov 24   ;;  %vm761_vm4 = vcmask 195584  }
  0x17   : > { %310 = vmatpush.msra.mxu2 %v2758_v3  ;;  %s2378_s5 = sshll.u32 %s3527_s7, 3  ;;  %v2808_v11 = vld [vmem:[%s3499_s2 + $0x58] sm:$0xff]  ;;  %v2828_v14 = vld [vmem:[%s3499_s2 + $0x30] sm:$0xff]  ;;  %v2840_v16 = vld [vmem:[%s3498_s1 + $0x60] sm:$0xff]  ;;  %vm3078_vm2 = vcmp.le.s32.totalorder %v250_v62, %v248_v61  ;;  %s189_s12 = sand.u32 1, %s2650_s16  }
  0x18   : > { %291 = vmatpush.msra.mxu1 %v2763_v4  ;;  %s2798_s9 = scalar_lea.vmem %s3497_s0, %s2378_s5  ;;  %330 = vmatpush.msra.mxu3 %v2780_v7  ;;  %v2833_v15 = vld [vmem:[%s3499_s2 + $0x50] sm:$0xff]  ;;  %v2846_v17 = vld [vmem:[%s3499_s2 + $0x28] sm:$0xff]  ;;  %v2859_v19 = vld [vmem:[%s3499_s2 + $0x20] sm:$0xff]  ;;  %s2376_s13 = sshll.u32 %s189_s12, 5 }
  0x19   : > { %311 = vmatpush.msra.mxu2 %v2768_v5  ;;  %v2814_v12 = vld [vmem:[%s2798_s9] sm:$0xff]  ;;  %v2851_v18 = vld [vmem:[%s3499_s2 + $0x48] sm:$0xff]  ;;  %v2873_v21 = vld [vmem:[%s3499_s2 + $0x78] sm:$0xff]  ;;  %s3440_s7 = scalar_lea.vmem [#allocation2], %s2376_s13  ;;  %s2486_s14 = sshll.u32 %s2710_s19, 5 }
  0x1a   : > { %292 = vmatpush.msra.mxu1 %v2785_v8  ;;  %331 = vmatpush.msra.mxu3 %v2819_v13  ;;  %v2864_v20 = vld [vmem:[%s3499_s2 + $0x40] sm:$0xff]  ;;  %v2878_v22 = vld [vmem:[%s3500_s3 + $0x38] sm:$0xff]  ;;  %v2889_v23 = vld [vmem:[%s3499_s2 + $0x70] sm:$0xff]  ;;  %s2306_s23 = scalar_lea.hbm %s3501_s4, %s2486_s14  ;;  %s2307_s27 = sshll.u32 %s3440_s7, 4  ;;  %s2308_s27 = int_to_ptr.vmem [resolvable:$true] %s2307_s27 }
  0x1b   : > { %312 = vmatpush.msra.mxu2 %v2790_v9  ;;  %2380 = vmatmul.msk.f32.vlgmr.msra.gmra.mxu1 %vm253_vm0, %v2814_v12  ;;  %v2894_v24 = vld [vmem:[%s3500_s3 + $0x30] sm:$0xff]  ;;  %v2901_v25 = vld [vmem:[%s3499_s2 + $0x68] sm:$0xff]  ;;  %v2908_v26 = vld [vmem:[%s3499_s2 + $0x60] sm:$0xff]  ;;  %s2309_s28 = sshll.u32 %s2306_s23, 4  ;;  %s2295_s19 = scalar_lea.sflag [#allocation3], %s189_s12  ;;  %s2310_s28 = int_to_ptr.hbm [resolvable:$true] %s2309_s28 }
  0x1c   : > { %2381 = vmatmul.msk.f32.vlgmr.msra.gmra.mxu2 %vm253_vm0, %v2814_v12  ;;  %369 = vmatpush.msrb.mxu1 %v2803_v10  ;;  %v2917_v27 = vld [vmem:[%s3500_s3 + $0x28] sm:$0xff]  ;;  %v2922_v28 = vld [vmem:[%s3500_s3 + $0x20] sm:$0xff]  ;;  %v2927_v29 = vld [vmem:[%s3500_s3 + $0x58] sm:$0xff]  ;;  %s2610_s29 = sshra.s32 %s2310_s28, 4  ;;  %s2616_s6 = scalar_lea.hbm %s3501_s4, 128  ;;  %s2611_s29 = int_to_ptr.hbm [resolvable:$true] %s2610_s29 }
  0x1d   : > { %389 = vmatpush.msrb.mxu2 %v2808_v11  ;;  %332 = vmatpush.msra.mxu3 %v2840_v16  ;;  %v2934_v30 = vld [vmem:[%s3500_s3 + $0x50] sm:$0xff]  ;;  %v2943_v31 = vld [vmem:[%s3500_s3 + $0x48] sm:$0xff]  ;;  %v2949_v32 = vld [vmem:[%s3500_s3 + $0x40] sm:$0xff]  ;;  %s2612_s30 = scalar_lea.hbm %s2611_s29, 32  ;;  %p2617_p0 = scmp.lt.s32.totalorder %s2611_s29, %s3501_s4 }
  0x1e   : > { %370 = vmatpush.msrb.mxu1 %v2828_v14  ;;  %2382 = vmatmul.msk.f32.vlgmr.msra.gmra.mxu3 %vm253_vm0, %v2814_v12  ;;  %v2955_v33 = vld [vmem:[%s3500_s3 + $0x78] sm:$0xff]  ;;  %v2963_v34 = vld [vmem:[%s3500_s3 + $0x70] sm:$0xff]  ;;  %v2969_v35 = vld [vmem:[%s3500_s3 + $0x68] sm:$0xff]  ;;  %p2613_p11 = scmp.ne.s32.totalorder %s2611_s29, %s2612_s30  ;;  %p2618_p1 = scmp.lt.s32.totalorder %s2616_s6, %s2612_s30 }
  0x1f   : > { %390 = vmatpush.msrb.mxu2 %v2833_v15  ;;  %409 = vmatpush.msrb.mxu3 %v2873_v21  ;;  %v2975_v36 = vld [vmem:[%s3500_s3 + $0x60] sm:$0xff]  ;;  %v2983_v37 = vld [vmem:[%s3498_s1 + $0x18] sm:$0xff]  ;;  %v2988_v38 = vld [vmem:[%s3498_s1 + $0x10] sm:$0xff] }
  0x20   : > { %371 = vmatpush.msrb.mxu1 %v2846_v17  ;;  %3507 = vst [vmem:[#allocation5_spill] sm:$0xff] %v2988_v38  ;;  %269 = vmatpush.msra.mxu0 %v2983_v37  ;;  %v2995_v39 = vld [vmem:[%s3498_s1 + $0x8] sm:$0xff]  ;;  %v3000_v40 = vld [vmem:[%s3498_s1] sm:$0xff]  ;;  %v3006_v41 = vld [vmem:[%s3499_s2 + $0x18] sm:$0xff]  ;;  %p2614_p12 = pnand %p2613_p11, %p2727_p5  ;;  %p2619_p2 = por %p2618_p1, %p2617_p0 }
  0x21   : > { %391 = vmatpush.msrb.mxu2 %v2851_v18  ;;  %410 = vmatpush.msrb.mxu3 %v2889_v23  ;;  %3508 = vst [vmem:[#allocation6_spill] sm:$0xff] %v3000_v40  ;;  %v3014_v42 = vld [vmem:[%s3499_s2 + $0x10] sm:$0xff]  ;;  %v3020_v44 = vld [vmem:[%s3499_s2 + $0x8] sm:$0xff]  ;;  %v3026_v45 = vld [vmem:[%s3499_s2] sm:$0xff] }
  0x22   : > { %372 = vmatpush.msrb.mxu1 %v2859_v19  ;;  %270 = vmatpush.msra.mxu0 %v2988_v38  ;;  %v3049_v54 = vld [vmem:[%s3500_s3 + $0x18] sm:$0xff]  ;;  %v3057_v55 = vld [vmem:[%s3500_s3 + $0x10] sm:$0xff]  ;;  %v3062_v56 = vld [vmem:[%s3500_s3 + $0x8] sm:$0xff]  ;;  %p2615_p13 = pneg %p2614_p12 }
  0x23   : > { %392 = vmatpush.msrb.mxu2 %v2864_v20  ;;  %2384 = vmatmul.msk.f32.vlgmr.msrb.gmra.mxu1 %vm253_vm0, %v2814_v12  ;;  %v3071_v58 = vld [vmem:[%s3500_s3] sm:$0xff] }
  0x24   : > { %2385 = vmatmul.msk.f32.vlgmr.msrb.gmra.mxu2 %vm253_vm0, %v2814_v12  ;;  %449 = vmatpush.msra.mxu1 %v2878_v22  ;;  %p2620_p3 = pnand %p2619_p2, %p2615_p13 }
  0x25   : > { %411 = vmatpush.msrb.mxu3 %v2901_v25  ;;  %469 = vmatpush.msra.mxu2 %v2927_v29 }
  0x26   : > { %450 = vmatpush.msra.mxu1 %v2894_v24  ;;  %271 = vmatpush.msra.mxu0 %v2995_v39 }
  0x27   : > { %412 = vmatpush.msrb.mxu3 %v2908_v26  ;;  %470 = vmatpush.msra.mxu2 %v2934_v30 }
  0x28   : > { %2386 = vmatmul.msk.f32.vlgmr.msrb.gmra.mxu3 %vm253_vm0, %v2814_v12  ;;  %451 = vmatpush.msra.mxu1 %v2917_v27 }
  0x29   : > { %471 = vmatpush.msra.mxu2 %v2943_v31  ;;  %489 = vmatpush.msra.mxu3 %v2955_v33 }
  0x2a   : > { %452 = vmatpush.msra.mxu1 %v2922_v28  ;;  %272 = vmatpush.msra.mxu0 %v3000_v40 }
  0x2b   : > { %2388 = vmatmul.msk.f32.vlgmr.msra.gmra.mxu1 %vm253_vm0, %v2814_v12  ;;  %472 = vmatpush.msra.mxu2 %v2949_v32 }
  0x2c   : > { %2389 = vmatmul.msk.f32.vlgmr.msra.gmra.mxu2 %vm253_vm0, %v2814_v12  ;;  %490 = vmatpush.msra.mxu3 %v2963_v34 }
  0x2d   : > { %2379 = vmatmul.msk.f32.vlgmr.msra.gmra.mxu0 %vm253_vm0, %v2814_v12 }
  0x2e   : > { %491 = vmatpush.msra.mxu3 %v2969_v35  ;;  %349 = vmatpush.msrb.mxu0 %v3006_v41 }
  0x30   : > { %492 = vmatpush.msra.mxu3 %v2975_v36  ;;  %350 = vmatpush.msrb.mxu0 %v3014_v42 }
  0x31   : > { %2390 = vmatmul.msk.f32.vlgmr.msra.gmra.mxu3 %vm253_vm0, %v2814_v12 }
  0x32   : > { %351 = vmatpush.msrb.mxu0 %v3020_v44 }
  0x34   : > { %352 = vmatpush.msrb.mxu0 %v3026_v45 }
  0x35   : > { %2383 = vmatmul.msk.f32.vlgmr.msrb.gmra.mxu0 %vm253_vm0, %v2814_v12 }
  0x36   : > { %429 = vmatpush.msra.mxu0 %v3049_v54 }
  0x38   : > { %430 = vmatpush.msra.mxu0 %v3057_v55 }
  0x3a   : > { %431 = vmatpush.msra.mxu0 %v3062_v56 }
  0x3c   : > { %432 = vmatpush.msra.mxu0 %v3071_v58 }
  0x3d   : > { %2387 = vmatmul.msk.f32.vlgmr.msra.gmra.mxu0 %vm253_vm0, %v2814_v12 }
  0x98   : > { %v294_v43 = vpop.f32.mrf.mxu1 }
  0x9f   : > { %v314_v46 = vpop.f32.mrf.mxu2 }
  0xa0   : > { %v374_v47 = vpop.f32.mrf.mxu1 }
  0xa1   : > { %2393 = vmatpush.xpose.msk.msrb.mxu1 %vm497_vm1, %v374_v47  ;;  %v334_v48 = vpop.f32.mrf.mxu3 }
  0xa4   : > { %2394 = vmatmul.msk.f32.vlgmr.msrb.gmra.mxu1 %vm497_vm1, %v294_v43 }
  0xa7   : > { %v394_v49 = vpop.f32.mrf.mxu2 }
  0xa8   : > { %2395 = vmatpush.xpose.msk.msrb.mxu2 %vm497_vm1, %v394_v49  ;;  %v454_v51 = vpop.f32.mrf.mxu1 }
  0xa9   : > { %695 = vmatpush.msra.mxu1 %v454_v51 }
  0xaa   : > { %v274_v57 = vpop.f32.mrf.mxu0 }
  0xab   : > { %2396 = vmatmul.msk.f32.vlgmr.msrb.gmra.mxu2 %vm497_vm1, %v314_v46  ;;  %v414_v50 = vpop.f32.mrf.mxu3  ;;  %801 = vmatpush.msrb.mxu1 %v2740_v0 }
  0xac   : > { %2397 = vmatpush.xpose.msk.msrb.mxu3 %vm497_vm1, %v414_v50 }
  0xad   : > { %802 = vmatpush.msrb.mxu1 %v2750_v2 }
  0xaf   : > { %2398 = vmatmul.msk.f32.vlgmr.msrb.gmra.mxu3 %vm497_vm1, %v334_v48  ;;  %803 = vmatpush.msrb.mxu1 %v2763_v4  ;;  %v474_v52 = vpop.f32.mrf.mxu2 }
  0xb0   : > { %718 = vmatpush.msra.mxu2 %v474_v52 }
  0xb1   : > { %804 = vmatpush.msrb.mxu1 %v2785_v8 }
  0xb2   : > { %821 = vmatpush.msrb.mxu2 %v2745_v1  ;;  %v354_v60 = vpop.f32.mrf.mxu0 }
  0xb3   : > { %2391 = vmatpush.xpose.msk.msrb.mxu0 %vm497_vm1, %v354_v60 }
  0xb4   : > { %822 = vmatpush.msrb.mxu2 %v2758_v3  ;;  %v494_v53 = vpop.f32.mrf.mxu3 }
  0xb5   : > { %741 = vmatpush.msra.mxu3 %v494_v53 }
  0xb6   : > { %823 = vmatpush.msrb.mxu2 %v2768_v5  ;;  %2392 = vmatmul.msk.f32.vlgmr.msrb.gmra.mxu0 %vm497_vm1, %v274_v57 }
  0xb7   : > { %841 = vmatpush.msrb.mxu3 %v2773_v6 }
  0xb8   : > { %824 = vmatpush.msrb.mxu2 %v2790_v9 }
  0xb9   : > { %842 = vmatpush.msrb.mxu3 %v2780_v7 }
  0xba   : > { %v434_v60 = vpop.f32.mrf.mxu0 }
  0xbb   : > { %843 = vmatpush.msrb.mxu3 %v2819_v13  ;;  %672 = vmatpush.msra.mxu0 %v434_v60 }
  0xbd   : > { %844 = vmatpush.msrb.mxu3 %v2840_v16  ;;  %781 = vmatpush.msrb.mxu0 %v2983_v37 }
  0xbf   : > { %782 = vmatpush.msrb.mxu0 %v2988_v38 }
  0xc1   : > { %783 = vmatpush.msrb.mxu0 %v2995_v39 }
  0xc3   : > { %784 = vmatpush.msrb.mxu0 %v3000_v40 }
 0x121   : > { %v547_v63 = vpop.f32.mrf.mxu1 }
 0x122   : > { %v603_v46 = vmul.f32 0.35355338, %v547_v63 }
 0x124   : > { %v607_v47 = vsel %vm3078_vm2, %v603_v46, -1e+30 }
 0x125   : > { %v613_v48 = vsel %vm497_vm1, %v607_v47, -inf }
 0x126   : > { %614 = vmax.xlane.f32.xlu1 %v613_v48 }
 0x12e   : > { %v573_v12 = vpop.f32.mrf.mxu2 }
 0x12f   : > { %v604_v49 = vmul.f32 0.35355338, %v573_v12 }
 0x131   : > { %v608_v50 = vsel %vm3078_vm2, %v604_v49, -1e+30 }
 0x132   : > { %v616_v51 = vsel %vm497_vm1, %v608_v50, -inf  ;;  %v599_v52 = vpop.f32.mrf.mxu3 }
 0x133   : > { %617 = vmax.xlane.f32.xlu0 %v616_v51  ;;  %v605_v53 = vmul.f32 0.35355338, %v599_v52 }
 0x135   : > { %v609_v57 = vsel %vm3078_vm2, %v605_v53, -1e+30 }
 0x136   : > { %v619_v59 = vsel %vm497_vm1, %v609_v57, -inf }
 0x13b   : > { %620 = vmax.xlane.f32.xlu0 %v619_v59 }
 0x199   : > { %v615_v61 = vpop.xlane.xlu1 %614 }
 0x19a   : > { %v623_v62 = vsub.f32 %v607_v47, %v615_v61  ;;  %v521_v61 = vpop.f32.mrf.mxu0 }
 0x19c   : > { %v628_v63 = vmul.f32 1.442695, %v623_v62 }
 0x19e   : > { %2530 = vpow2.f32 %v628_v63  ;;  %v602_v63 = vmul.f32 0.35355338, %v521_v61 }
 0x1a4   : > { %v2531_v46 = vpop.eup %2530 }
 0x1a5   : > { %v637_v12 = vsel %vm497_vm1, %v2531_v46, 0.0 }
 0x1a6   : > { %v618_v48 = vpop.xlane.xlu0 %617  ;;  %638 = vadd.xlane.f32.xlu0 %v637_v12 }
 0x1a7   : > { %v624_v49 = vsub.f32 %v608_v50, %v618_v48  ;;  %v606_v50 = vsel %vm3078_vm2, %v602_v63, -1e+30 }
 0x1a8   : > { %v610_v48 = vsel %vm497_vm1, %v606_v50, -inf }
 0x1a9   : > { %v630_v51 = vmul.f32 1.442695, %v624_v49 }
 0x1ab   : > { %2532 = vpow2.f32 %v630_v51 }
 0x1ae   : > { %v621_v52 = vpop.xlane.xlu0 %620 }
 0x1af   : > { %v625_v53 = vsub.f32 %v609_v57, %v621_v52  ;;  %v3105_v52 = vld [vmem:[%s2798_s9 + $0x8] sm:$0xff] }
 0x1b1   : > { %v2533_v59 = vpop.eup %2532  ;;  %v632_v60 = vmul.f32 1.442695, %v625_v53 }
 0x1b2   : > { %v640_v47 = vsel %vm497_vm1, %v2533_v59, 0.0 }
 0x1b3   : > { %2534 = vpow2.f32 %v632_v60  ;;  %641 = vadd.xlane.f32.xlu1 %v640_v47 }
 0x1b9   : > { %v2535_v62 = vpop.eup %2534 }
 0x1ba   : > { %v643_v40 = vsel %vm497_vm1, %v2535_v62, 0.0 }
 0x1bb   : > { %644 = vadd.xlane.f32.xlu2 %v643_v40 }
 0x1c3   : > { %611 = vmax.xlane.f32.xlu2 %v610_v48 }
 0x219   : > { %v639_v57 = vpop.xlane.xlu0 %638 }
 0x21a   : > { %2536 = vrcp.f32 %v639_v57 }
 0x220   : > { %v2537_v12 = vpop.eup %2536 }
 0x221   : > { %v651_v49 = vmul.f32 %v2537_v12, %v2531_v46 }
 0x223   : > { %2400 = vmatmul.msk.f32.vlgmr.msra.gmra.mxu1 %vm497_vm1, %v651_v49 }
 0x224   : > { %881 = vmatpush.msra.mxu1 %v2803_v10 }
 0x226   : > { %v642_v51 = vpop.xlane.xlu1 %641  ;;  %882 = vmatpush.msra.mxu1 %v2828_v14 }
 0x227   : > { %2538 = vrcp.f32 %v642_v51 }
 0x228   : > { %883 = vmatpush.msra.mxu1 %v2846_v17 }
 0x22a   : > { %884 = vmatpush.msra.mxu1 %v2859_v19 }
 0x22b   : > { %2405 = vmatmul.msk.f32.vlgmr.msrb.gmra.mxu1 %vm253_vm0, %v3105_v52 }
 0x22c   : > { %961 = vmatpush.msrb.mxu1 %v2878_v22 }
 0x22d   : > { %v2539_v40 = vpop.eup %2538 }
 0x22e   : > { %v652_v46 = vmul.f32 %v2539_v40, %v2533_v59  ;;  %v645_v53 = vpop.xlane.xlu2 %644  ;;  %962 = vmatpush.msrb.mxu1 %v2894_v24 }
 0x22f   : > { %2540 = vrcp.f32 %v645_v53 }
 0x230   : > { %2401 = vmatmul.msk.f32.vlgmr.msra.gmra.mxu2 %vm497_vm1, %v652_v46  ;;  %963 = vmatpush.msrb.mxu1 %v2917_v27 }
 0x231   : > { %901 = vmatpush.msra.mxu2 %v2808_v11 }
 0x232   : > { %964 = vmatpush.msrb.mxu1 %v2922_v28 }
 0x233   : > { %902 = vmatpush.msra.mxu2 %v2833_v15  ;;  %2409 = vmatmul.msk.f32.vlgmr.msra.gmra.mxu1 %vm253_vm0, %v3105_v52 }
 0x235   : > { %v2541_v60 = vpop.eup %2540  ;;  %903 = vmatpush.msra.mxu2 %v2851_v18 }
 0x236   : > { %v653_v59 = vmul.f32 %v2541_v60, %v2535_v62  ;;  %v612_v47 = vpop.xlane.xlu2 %611 }
 0x237   : > { %v622_v61 = vsub.f32 %v606_v50, %v612_v47  ;;  %904 = vmatpush.msra.mxu2 %v2864_v20 }
 0x238   : > { %2402 = vmatmul.msk.f32.vlgmr.msra.gmra.mxu3 %vm497_vm1, %v653_v59  ;;  %2406 = vmatmul.msk.f32.vlgmr.msrb.gmra.mxu2 %vm253_vm0, %v3105_v52 }
 0x239   : > { %v626_v63 = vmul.f32 1.442695, %v622_v61  ;;  %921 = vmatpush.msra.mxu3 %v2873_v21  ;;  %981 = vmatpush.msrb.mxu2 %v2927_v29 }
 0x23b   : > { %2542 = vpow2.f32 %v626_v63  ;;  %922 = vmatpush.msra.mxu3 %v2889_v23  ;;  %982 = vmatpush.msrb.mxu2 %v2934_v30 }
 0x23c   : > { %2413 = vmatmul.msk.f32.vlgmr.msrb.gmra.mxu1 %vm253_vm0, %v3105_v52 }
 0x23d   : > { %923 = vmatpush.msra.mxu3 %v2901_v25  ;;  %983 = vmatpush.msrb.mxu2 %v2943_v31 }
 0x23f   : > { %924 = vmatpush.msra.mxu3 %v2908_v26  ;;  %984 = vmatpush.msrb.mxu2 %v2949_v32 }
 0x240   : > { %2407 = vmatmul.msk.f32.vlgmr.msrb.gmra.mxu3 %vm253_vm0, %v3105_v52  ;;  %2410 = vmatmul.msk.f32.vlgmr.msra.gmra.mxu2 %vm253_vm0, %v3105_v52 }
 0x241   : > { %v2543_v62 = vpop.eup %2542  ;;  %1001 = vmatpush.msrb.mxu3 %v2955_v33 }
 0x242   : > { %v634_v50 = vsel %vm497_vm1, %v2543_v62, 0.0 }
 0x243   : > { %635 = vadd.xlane.f32.xlu1 %v634_v50  ;;  %1002 = vmatpush.msrb.mxu3 %v2963_v34 }
 0x245   : > { %1003 = vmatpush.msrb.mxu3 %v2969_v35 }
 0x247   : > { %1004 = vmatpush.msrb.mxu3 %v2975_v36 }
 0x248   : > { %2411 = vmatmul.msk.f32.vlgmr.msra.gmra.mxu3 %vm253_vm0, %v3105_v52  ;;  %2414 = vmatmul.msk.f32.vlgmr.msrb.gmra.mxu2 %vm253_vm0, %v3105_v52 }
 0x250   : > { %2415 = vmatmul.msk.f32.vlgmr.msrb.gmra.mxu3 %vm253_vm0, %v3105_v52 }
 0x2a0   : > { %v3150_v48 = vpop.f32.mrf.mxu1 }
 0x2a1   : > { %3511 = vst [vmem:[#allocation7_spill] sm:$0xff] %v3150_v48 }
 0x2a8   : > { %v806_v57 = vpop.f32.mrf.mxu1 }
 0x2b0   : > { %v886_v12 = vpop.f32.mrf.mxu1 }
 0x2b1   : > { %2418 = vmatpush.xpose.msk.msra.mxu1 %vm497_vm1, %v886_v12 }
 0x2b3   : > { %v3153_v49 = vpop.f32.mrf.mxu2 }
 0x2b4   : > { %3512 = vst [vmem:[#allocation8_spill] sm:$0xff] %v3153_v49  ;;  %2419 = vmatmul.msk.f32.vlgmr.msra.gmra.mxu1 %vm497_vm1, %v806_v57 }
 0x2b6   : > { %v636_v51 = vpop.xlane.xlu1 %635 }
 0x2b7   : > { %2544 = vrcp.f32 %v636_v51 }
 0x2b9   : > { %v966_v40 = vpop.f32.mrf.mxu1 }
 0x2ba   : > { %1206 = vmatpush.msrb.mxu1 %v966_v40 }
 0x2bb   : > { %v3156_v46 = vpop.f32.mrf.mxu3  ;;  %v826_v53 = vpop.f32.mrf.mxu2 }
 0x2bc   : > { %3513 = vst [vmem:[#allocation9_spill] sm:$0xff] %v3156_v46  ;;  %1311 = vmatpush.msra.mxu1 %v2740_v0 }
 0x2bd   : > { %v2545_v60 = vpop.eup %2544 }
 0x2be   : > { %1312 = vmatpush.msra.mxu1 %v2750_v2  ;;  %v650_v59 = vmul.f32 %v2545_v60, %v2543_v62 }
 0x2c0   : > { %1313 = vmatpush.msra.mxu1 %v2763_v4  ;;  %2399 = vmatmul.msk.f32.vlgmr.msra.gmra.mxu0 %vm497_vm1, %v650_v59 }
 0x2c1   : > { %861 = vmatpush.msra.mxu0 %v3006_v41 }
 0x2c2   : > { %1314 = vmatpush.msra.mxu1 %v2785_v8 }
 0x2c3   : > { %v846_v47 = vpop.f32.mrf.mxu3  ;;  %v906_v61 = vpop.f32.mrf.mxu2  ;;  %862 = vmatpush.msra.mxu0 %v3014_v42 }
 0x2c4   : > { %2420 = vmatpush.xpose.msk.msra.mxu2 %vm497_vm1, %v906_v61 }
 0x2c5   : > { %863 = vmatpush.msra.mxu0 %v3020_v44 }
 0x2c7   : > { %2421 = vmatmul.msk.f32.vlgmr.msra.gmra.mxu2 %vm497_vm1, %v826_v53  ;;  %864 = vmatpush.msra.mxu0 %v3026_v45 }
 0x2c8   : > { %2404 = vmatmul.msk.f32.vlgmr.msrb.gmra.mxu0 %vm253_vm0, %v3105_v52 }
 0x2c9   : > { %941 = vmatpush.msrb.mxu0 %v3049_v54 }
 0x2cb   : > { %v926_v63 = vpop.f32.mrf.mxu3  ;;  %942 = vmatpush.msrb.mxu0 %v3057_v55  ;;  %v986_v62 = vpop.f32.mrf.mxu2 }
 0x2cc   : > { %2422 = vmatpush.xpose.msk.msra.mxu3 %vm497_vm1, %v926_v63  ;;  %1229 = vmatpush.msrb.mxu2 %v986_v62 }
 0x2cd   : > { %943 = vmatpush.msrb.mxu0 %v3062_v56 }
 0x2ce   : > { %1331 = vmatpush.msra.mxu2 %v2745_v1 }
 0x2cf   : > { %2423 = vmatmul.msk.f32.vlgmr.msra.gmra.mxu3 %vm497_vm1, %v846_v47  ;;  %944 = vmatpush.msrb.mxu0 %v3071_v58 }
 0x2d0   : > { %2408 = vmatmul.msk.f32.vlgmr.msra.gmra.mxu0 %vm253_vm0, %v3105_v52  ;;  %1332 = vmatpush.msra.mxu2 %v2758_v3 }
 0x2d2   : > { %1333 = vmatpush.msra.mxu2 %v2768_v5 }
 0x2d3   : > { %v1006_v50 = vpop.f32.mrf.mxu3 }
 0x2d4   : > { %1334 = vmatpush.msra.mxu2 %v2790_v9  ;;  %1252 = vmatpush.msrb.mxu3 %v1006_v50 }
 0x2d6   : > { %1351 = vmatpush.msra.mxu3 %v2773_v6 }
 0x2d8   : > { %2412 = vmatmul.msk.f32.vlgmr.msrb.gmra.mxu0 %vm253_vm0, %v3105_v52  ;;  %1352 = vmatpush.msra.mxu3 %v2780_v7 }
 0x2da   : > { %1353 = vmatpush.msra.mxu3 %v2819_v13 }
 0x2dc   : > { %1354 = vmatpush.msra.mxu3 %v2840_v16 }
 0x331   : > { %v1058_v52 = vpop.f32.mrf.mxu1 }
 0x332   : > { %v1114_v57 = vmul.f32 0.35355338, %v1058_v52 }
 0x334   : > { %v1118_v12 = vsel %vm3078_vm2, %v1114_v57, -1e+30 }
 0x335   : > { %v1124_v51 = vsel %vm497_vm1, %v1118_v12, -inf }
 0x336   : > { %1125 = vmax.xlane.f32.xlu1 %v1124_v51 }
 0x33d   : > { %v3192_v40 = vpop.f32.mrf.mxu0 }
 0x33e   : > { %3514 = vst [vmem:[#allocation10_spill] sm:$0xff] %v3192_v40 }
 0x345   : > { %v786_v53 = vpop.f32.mrf.mxu0 }
 0x34a   : > { %v1084_v60 = vpop.f32.mrf.mxu2 }
 0x34b   : > { %v1115_v59 = vmul.f32 0.35355338, %v1084_v60  ;;  %v3515_v60 = vld [vmem:[#allocation6_spill] sm:$0xff] }
 0x34d   : > { %v866_v47 = vpop.f32.mrf.mxu0  ;;  %v1119_v61 = vsel %vm3078_vm2, %v1115_v59, -1e+30 }
 0x34e   : > { %2416 = vmatpush.xpose.msk.msra.mxu0 %vm497_vm1, %v866_v47  ;;  %v1127_v63 = vsel %vm497_vm1, %v1119_v61, -inf }
 0x34f   : > { %1128 = vmax.xlane.f32.xlu2 %v1127_v63 }
 0x351   : > { %2417 = vmatmul.msk.f32.vlgmr.msra.gmra.mxu0 %vm497_vm1, %v786_v53 }
 0x352   : > { %v1110_v62 = vpop.f32.mrf.mxu3 }
 0x353   : > { %v1116_v50 = vmul.f32 0.35355338, %v1110_v62 }
 0x355   : > { %v1120_v52 = vsel %vm3078_vm2, %v1116_v50, -1e+30  ;;  %v946_v51 = vpop.f32.mrf.mxu0 }
 0x356   : > { %v1130_v57 = vsel %vm497_vm1, %v1120_v52, -inf  ;;  %1183 = vmatpush.msrb.mxu0 %v946_v51 }
 0x357   : > { %1131 = vmax.xlane.f32.xlu0 %v1130_v57 }
 0x358   : > { %1291 = vmatpush.msra.mxu0 %v2983_v37 }
 0x35a   : > { %1292 = vmatpush.msra.mxu0 %v2988_v38 }
 0x35c   : > { %1293 = vmatpush.msra.mxu0 %v2995_v39 }
 0x35e   : > { %1294 = vmatpush.msra.mxu0 %v3515_v60 }
 0x3a9   : > { %v1126_v59 = vpop.xlane.xlu1 %1125 }
 0x3aa   : > { %v1134_v63 = vsub.f32 %v1118_v12, %v1126_v59 }
 0x3ac   : > { %v1139_v50 = vmul.f32 1.442695, %v1134_v63 }
 0x3c2   : > { %v1129_v53 = vpop.xlane.xlu2 %1128 }
 0x3c3   : > { %v1135_v47 = vsub.f32 %v1119_v61, %v1129_v53 }
 0x3c5   : > { %v1141_v62 = vmul.f32 1.442695, %v1135_v47 }
 0x3c7   : > { %2546 = vpow2.f32 %v1141_v62 }
 0x3c8   : > { %2548 = vpow2.f32 %v1139_v50 }
 0x3ca   : > { %v1132_v46 = vpop.xlane.xlu0 %1131 }
 0x3cb   : > { %v1136_v40 = vsub.f32 %v1120_v52, %v1132_v46 }
 0x3cd   : > { %v2547_v57 = vpop.eup %2546  ;;  %v1143_v51 = vmul.f32 1.442695, %v1136_v40 }
 0x3ce   : > { %v1032_v48 = vpop.f32.mrf.mxu0  ;;  %v1151_v49 = vsel %vm497_vm1, %v2547_v57, 0.0  ;;  %v2549_v12 = vpop.eup %2548 }
 0x3cf   : > { %2550 = vpow2.f32 %v1143_v51  ;;  %v1113_v38 = vmul.f32 0.35355338, %v1032_v48  ;;  %1152 = vadd.xlane.f32.xlu2 %v1151_v49  ;;  %v1148_v46 = vsel %vm497_vm1, %v2549_v12, 0.0  ;;  %v3216_v51 = vld [vmem:[%s2798_s9 + $0x10] sm:$0xff] }
 0x3d1   : > { %v1117_v60 = vsel %vm3078_vm2, %v1113_v38, -1e+30 }
 0x3d2   : > { %v1121_v61 = vsel %vm497_vm1, %v1117_v60, -inf }
 0x3d3   : > { %1122 = vmax.xlane.f32.xlu1 %v1121_v61 }
 0x3d5   : > { %v2551_v59 = vpop.eup %2550 }
 0x3d6   : > { %v1154_v53 = vsel %vm497_vm1, %v2551_v59, 0.0 }
 0x3d7   : > { %1155 = vadd.xlane.f32.xlu0 %v1154_v53  ;;  %1149 = vadd.xlane.f32.xlu2 %v1148_v46 }
 0x442   : > { %v1153_v40 = vpop.xlane.xlu2 %1152 }
 0x443   : > { %2552 = vrcp.f32 %v1153_v40 }
 0x446   : > { %v1123_v52 = vpop.xlane.xlu1 %1122 }
 0x447   : > { %v1133_v48 = vsub.f32 %v1117_v60, %v1123_v52 }
 0x449   : > { %v2553_v49 = vpop.eup %2552  ;;  %v1137_v47 = vmul.f32 1.442695, %v1133_v48 }
 0x44a   : > { %v1163_v63 = vmul.f32 %v2553_v49, %v2547_v57  ;;  %v1156_v38 = vpop.xlane.xlu0 %1155  ;;  %v1150_v62 = vpop.xlane.xlu2 %1149 }
 0x44b   : > { %2554 = vpow2.f32 %v1137_v47 }
 0x44c   : > { %2556 = vrcp.f32 %v1156_v38  ;;  %2426 = vmatmul.msk.f32.vlgmr.msrb.gmra.mxu2 %vm497_vm1, %v1163_v63 }
 0x44d   : > { %2558 = vrcp.f32 %v1150_v62  ;;  %1411 = vmatpush.msrb.mxu2 %v2808_v11 }
 0x44f   : > { %1412 = vmatpush.msrb.mxu2 %v2833_v15 }
 0x451   : > { %v2555_v50 = vpop.eup %2554  ;;  %1413 = vmatpush.msrb.mxu2 %v2851_v18 }
 0x452   : > { %v2557_v60 = vpop.eup %2556  ;;  %v1145_v61 = vsel %vm497_vm1, %v2555_v50, 0.0 }
 0x453   : > { %v2559_v57 = vpop.eup %2558  ;;  %v1164_v53 = vmul.f32 %v2557_v60, %v2551_v59  ;;  %1146 = vadd.xlane.f32.xlu0 %v1145_v61  ;;  %1414 = vmatpush.msrb.mxu2 %v2864_v20 }
 0x454   : > { %v1162_v46 = vmul.f32 %v2559_v57, %v2549_v12  ;;  %2432 = vmatmul.msk.f32.vlgmr.msra.gmra.mxu2 %vm253_vm0, %v3216_v51  ;;  %v3517_v57 = vld [vmem:[#allocation6_spill] sm:$0xff] }
 0x455   : > { %2427 = vmatmul.msk.f32.vlgmr.msrb.gmra.mxu3 %vm497_vm1, %v1164_v53  ;;  %1491 = vmatpush.msra.mxu2 %v2927_v29 }
 0x456   : > { %2425 = vmatmul.msk.f32.vlgmr.msrb.gmra.mxu1 %vm497_vm1, %v1162_v46  ;;  %1431 = vmatpush.msrb.mxu3 %v2873_v21 }
 0x457   : > { %1391 = vmatpush.msrb.mxu1 %v2803_v10  ;;  %1492 = vmatpush.msra.mxu2 %v2934_v30 }
 0x458   : > { %1432 = vmatpush.msrb.mxu3 %v2889_v23 }
 0x459   : > { %1392 = vmatpush.msrb.mxu1 %v2828_v14  ;;  %1493 = vmatpush.msra.mxu2 %v2943_v31 }
 0x45a   : > { %1433 = vmatpush.msrb.mxu3 %v2901_v25 }
 0x45b   : > { %1393 = vmatpush.msrb.mxu1 %v2846_v17  ;;  %1494 = vmatpush.msra.mxu2 %v2949_v32 }
 0x45c   : > { %2436 = vmatmul.msk.f32.vlgmr.msrb.gmra.mxu2 %vm253_vm0, %v3216_v51  ;;  %1434 = vmatpush.msrb.mxu3 %v2908_v26 }
 0x45d   : > { %2433 = vmatmul.msk.f32.vlgmr.msra.gmra.mxu3 %vm253_vm0, %v3216_v51  ;;  %1394 = vmatpush.msrb.mxu1 %v2859_v19 }
 0x45e   : > { %2431 = vmatmul.msk.f32.vlgmr.msra.gmra.mxu1 %vm253_vm0, %v3216_v51  ;;  %1511 = vmatpush.msra.mxu3 %v2955_v33 }
 0x45f   : > { %1471 = vmatpush.msra.mxu1 %v2878_v22 }
 0x460   : > { %1512 = vmatpush.msra.mxu3 %v2963_v34 }
 0x461   : > { %1472 = vmatpush.msra.mxu1 %v2894_v24 }
 0x462   : > { %1513 = vmatpush.msra.mxu3 %v2969_v35 }
 0x463   : > { %1473 = vmatpush.msra.mxu1 %v2917_v27 }
 0x464   : > { %2440 = vmatmul.msk.f32.vlgmr.msra.gmra.mxu2 %vm253_vm0, %v3216_v51  ;;  %1514 = vmatpush.msra.mxu3 %v2975_v36 }
 0x465   : > { %2437 = vmatmul.msk.f32.vlgmr.msrb.gmra.mxu3 %vm253_vm0, %v3216_v51  ;;  %1474 = vmatpush.msra.mxu1 %v2922_v28 }
 0x466   : > { %2435 = vmatmul.msk.f32.vlgmr.msrb.gmra.mxu1 %vm253_vm0, %v3216_v51 }
 0x46d   : > { %2441 = vmatmul.msk.f32.vlgmr.msra.gmra.mxu3 %vm253_vm0, %v3216_v51 }
 0x46e   : > { %2439 = vmatmul.msk.f32.vlgmr.msra.gmra.mxu1 %vm253_vm0, %v3216_v51 }
 0x4c6   : > { %v1147_v10 = vpop.xlane.xlu0 %1146 }
 0x4c7   : > { %2560 = vrcp.f32 %v1147_v10 }
 0x4cd   : > { %v2561_v14 = vpop.eup %2560 }
 0x4ce   : > { %v1161_v12 = vmul.f32 %v2561_v14, %v2555_v50 }
 0x4cf   : > { %v3261_v59 = vpop.f32.mrf.mxu2 }
 0x4d0   : > { %2424 = vmatmul.msk.f32.vlgmr.msrb.gmra.mxu0 %vm497_vm1, %v1161_v12 }
 0x4d1   : > { %1371 = vmatpush.msrb.mxu0 %v3006_v41 }
 0x4d3   : > { %v3265_v40 = vpop.f32.mrf.mxu1  ;;  %1372 = vmatpush.msrb.mxu0 %v3014_v42 }
 0x4d5   : > { %1373 = vmatpush.msrb.mxu0 %v3020_v44 }
 0x4d7   : > { %v1336_v52 = vpop.f32.mrf.mxu2  ;;  %1374 = vmatpush.msrb.mxu0 %v3026_v45 }
 0x4d8   : > { %v3270_v48 = vpop.f32.mrf.mxu3  ;;  %2430 = vmatmul.msk.f32.vlgmr.msra.gmra.mxu0 %vm253_vm0, %v3216_v51 }
 0x4d9   : > { %1451 = vmatpush.msra.mxu0 %v3049_v54 }
 0x4db   : > { %v1316_v49 = vpop.f32.mrf.mxu1  ;;  %1452 = vmatpush.msra.mxu0 %v3057_v55 }
 0x4dd   : > { %1453 = vmatpush.msra.mxu0 %v3062_v56 }
 0x4df   : > { %v1416_v47 = vpop.f32.mrf.mxu2  ;;  %1454 = vmatpush.msra.mxu0 %v3071_v58 }
 0x4e0   : > { %v1356_v63 = vpop.f32.mrf.mxu3  ;;  %2434 = vmatmul.msk.f32.vlgmr.msrb.gmra.mxu0 %vm253_vm0, %v3216_v51  ;;  %2446 = vmatpush.xpose.msk.msrb.mxu2 %vm497_vm1, %v1416_v47 }
 0x4e3   : > { %v1396_v38 = vpop.f32.mrf.mxu1  ;;  %2447 = vmatmul.msk.f32.vlgmr.msrb.gmra.mxu2 %vm497_vm1, %v1336_v52 }
 0x4e4   : > { %2444 = vmatpush.xpose.msk.msrb.mxu1 %vm497_vm1, %v1396_v38 }
 0x4e7   : > { %2445 = vmatmul.msk.f32.vlgmr.msrb.gmra.mxu1 %vm497_vm1, %v1316_v49  ;;  %v1496_v60 = vpop.f32.mrf.mxu2 }
 0x4e8   : > { %v1436_v62 = vpop.f32.mrf.mxu3  ;;  %2438 = vmatmul.msk.f32.vlgmr.msra.gmra.mxu0 %vm253_vm0, %v3216_v51  ;;  %1739 = vmatpush.msra.mxu2 %v1496_v60 }
 0x4e9   : > { %2448 = vmatpush.xpose.msk.msrb.mxu3 %vm497_vm1, %v1436_v62 }
 0x4ea   : > { %1841 = vmatpush.msrb.mxu2 %v2745_v1 }
 0x4eb   : > { %v1476_v50 = vpop.f32.mrf.mxu1 }
 0x4ec   : > { %2449 = vmatmul.msk.f32.vlgmr.msrb.gmra.mxu3 %vm497_vm1, %v1356_v63  ;;  %1716 = vmatpush.msra.mxu1 %v1476_v50 }
 0x4ed   : > { %1842 = vmatpush.msrb.mxu2 %v2758_v3 }
 0x4ee   : > { %1821 = vmatpush.msrb.mxu1 %v2740_v0 }
 0x4ef   : > { %1843 = vmatpush.msrb.mxu2 %v2768_v5 }
 0x4f0   : > { %1822 = vmatpush.msrb.mxu1 %v2750_v2  ;;  %v1516_v51 = vpop.f32.mrf.mxu3 }
 0x4f1   : > { %1844 = vmatpush.msrb.mxu2 %v2790_v9  ;;  %1762 = vmatpush.msra.mxu3 %v1516_v51 }
 0x4f2   : > { %1823 = vmatpush.msrb.mxu1 %v2763_v4 }
 0x4f3   : > { %1861 = vmatpush.msrb.mxu3 %v2773_v6 }
 0x4f4   : > { %1824 = vmatpush.msrb.mxu1 %v2785_v8 }
 0x4f5   : > { %1862 = vmatpush.msrb.mxu3 %v2780_v7 }
 0x4f7   : > { %1863 = vmatpush.msrb.mxu3 %v2819_v13 }
 0x4f9   : > { %1864 = vmatpush.msrb.mxu3 %v2840_v16  ;;  %v3516_v16 = vld [vmem:[#allocation5_spill] sm:$0xff] }
 0x54d   : > { %v3299_v0 = vpop.f32.mrf.mxu0 }
 0x555   : > { %v1296_v2 = vpop.f32.mrf.mxu0 }
 0x55d   : > { %v1376_v1 = vpop.f32.mrf.mxu0 }
 0x55e   : > { %2442 = vmatpush.xpose.msk.msrb.mxu0 %vm497_vm1, %v1376_v1 }
 0x561   : > { %2443 = vmatmul.msk.f32.vlgmr.msrb.gmra.mxu0 %vm497_vm1, %v1296_v2 }
 0x564   : > { %v1568_v3 = vpop.f32.mrf.mxu1 }
 0x565   : > { %v1624_v4 = vmul.f32 0.35355338, %v1568_v3  ;;  %v1456_v5 = vpop.f32.mrf.mxu0 }
 0x566   : > { %v1594_v8 = vpop.f32.mrf.mxu2  ;;  %1693 = vmatpush.msra.mxu0 %v1456_v5 }
 0x567   : > { %v1625_v6 = vmul.f32 0.35355338, %v1594_v8  ;;  %v1628_v7 = vsel %vm3078_vm2, %v1624_v4, -1e+30 }
 0x568   : > { %1801 = vmatpush.msrb.mxu0 %v2983_v37  ;;  %v1634_v9 = vsel %vm497_vm1, %v1628_v7, -inf }
 0x569   : > { %1635 = vmax.xlane.f32.xlu0 %v1634_v9  ;;  %v1629_v13 = vsel %vm3078_vm2, %v1625_v6, -1e+30 }
 0x56a   : > { %1802 = vmatpush.msrb.mxu0 %v3516_v16  ;;  %v1637_v61 = vsel %vm497_vm1, %v1629_v13, -inf }
 0x56b   : > { %1638 = vmax.xlane.f32.xlu1 %v1637_v61 }
 0x56c   : > { %1803 = vmatpush.msrb.mxu0 %v2995_v39 }
 0x56e   : > { %1804 = vmatpush.msrb.mxu0 %v3517_v57 }
 0x56f   : > { %v1620_v53 = vpop.f32.mrf.mxu3 }
 0x570   : > { %v1626_v46 = vmul.f32 0.35355338, %v1620_v53 }
 0x572   : > { %v1630_v37 = vsel %vm3078_vm2, %v1626_v46, -1e+30 }
 0x573   : > { %v1640_v10 = vsel %vm497_vm1, %v1630_v37, -inf }
 0x574   : > { %1641 = vmax.xlane.f32.xlu2 %v1640_v10 }
 0x5dc   : > { %v1636_v14 = vpop.xlane.xlu0 %1635 }
 0x5dd   : > { %v1644_v63 = vsub.f32 %v1628_v7, %v1636_v14 }
 0x5de   : > { %v1542_v12 = vpop.f32.mrf.mxu0  ;;  %v1639_v52 = vpop.xlane.xlu1 %1638 }
 0x5df   : > { %v1623_v49 = vmul.f32 0.35355338, %v1542_v12  ;;  %v1645_v47 = vsub.f32 %v1629_v13, %v1639_v52  ;;  %v1649_v50 = vmul.f32 1.442695, %v1644_v63  ;;  %v2455_v12 = vld [vmem:[%s2798_s9 + $0x18] sm:$0xff] }
 0x5e1   : > { %v1651_v38 = vmul.f32 1.442695, %v1645_v47  ;;  %v1627_v39 = vsel %vm3078_vm2, %v1623_v49, -1e+30 }
 0x5e2   : > { %v1631_v62 = vsel %vm497_vm1, %v1627_v39, -inf }
 0x5e3   : > { %2562 = vpow2.f32 %v1651_v38  ;;  %1632 = vmax.xlane.f32.xlu0 %v1631_v62 }
 0x5e4   : > { %2564 = vpow2.f32 %v1649_v50 }
 0x5e7   : > { %v1642_v60 = vpop.xlane.xlu2 %1641 }
 0x5e8   : > { %v1646_v51 = vsub.f32 %v1630_v37, %v1642_v60 }
 0x5e9   : > { %v2563_v2 = vpop.eup %2562 }
 0x5ea   : > { %v1653_v1 = vmul.f32 1.442695, %v1646_v51  ;;  %v1661_v3 = vsel %vm497_vm1, %v2563_v2, 0.0  ;;  %v2565_v4 = vpop.eup %2564 }
 0x5eb   : > { %1662 = vadd.xlane.f32.xlu1 %v1661_v3  ;;  %v1658_v8 = vsel %vm497_vm1, %v2565_v4, 0.0 }
 0x5ec   : > { %2566 = vpow2.f32 %v1653_v1 }
 0x5f2   : > { %v2567_v5 = vpop.eup %2566 }
 0x5f3   : > { %1659 = vadd.xlane.f32.xlu1 %v1658_v8  ;;  %v1664_v6 = vsel %vm497_vm1, %v2567_v5, 0.0 }
 0x5f4   : > { %1665 = vadd.xlane.f32.xlu2 %v1664_v6 }
 0x656   : > { %v1633_v7 = vpop.xlane.xlu0 %1632 }
 0x657   : > { %v1643_v9 = vsub.f32 %v1627_v39, %v1633_v7 }
 0x659   : > { %v1647_v13 = vmul.f32 1.442695, %v1643_v9 }
 0x65b   : > { %2568 = vpow2.f32 %v1647_v13 }
 0x65e   : > { %v1663_v16 = vpop.xlane.xlu1 %1662 }
 0x65f   : > { %2570 = vrcp.f32 %v1663_v16 }
 0x661   : > { %v2569_v61 = vpop.eup %2568 }
 0x662   : > { %v1655_v57 = vsel %vm497_vm1, %v2569_v61, 0.0 }
 0x663   : > { %1656 = vadd.xlane.f32.xlu2 %v1655_v57 }
 0x665   : > { %v2571_v53 = vpop.eup %2570 }
 0x666   : > { %v1673_v46 = vmul.f32 %v2571_v53, %v2563_v2  ;;  %v1660_v37 = vpop.xlane.xlu1 %1659 }
 0x667   : > { %2572 = vrcp.f32 %v1660_v37  ;;  %v1666_v10 = vpop.xlane.xlu2 %1665  ;;  %v3519_v37 = vld [vmem:[#allocation7_spill] sm:$0xff] }
 0x668   : > { %2574 = vrcp.f32 %v1666_v10  ;;  %2452 = vmatmul.msk.f32.vlgmr.msra.gmra.mxu2 %vm497_vm1, %v1673_v46  ;;  %v3518_v46 = vld [vmem:[#allocation8_spill] sm:$0xff] }
 0x669   : > { %1921 = vmatpush.msra.mxu2 %v2808_v11  ;;  %v2594_v11 = vld [vmem:[%s3499_s2 + $0x38] sm:$0xff] }
 0x66b   : > { %1922 = vmatpush.msra.mxu2 %v2833_v15  ;;  %v2595_v15 = vld [vmem:[%s3499_s2 + $0x30] sm:$0xff] }
 0x66d   : > { %v2573_v14 = vpop.eup %2572  ;;  %1923 = vmatpush.msra.mxu2 %v2851_v18 }
 0x66e   : > { %v2575_v52 = vpop.eup %2574  ;;  %v1672_v49 = vmul.f32 %v2573_v14, %v2565_v4 }
 0x66f   : > { %v1674_v47 = vmul.f32 %v2575_v52, %v2567_v5  ;;  %1924 = vmatpush.msra.mxu2 %v2864_v20 }
 0x670   : > { %2451 = vmatmul.msk.f32.vlgmr.msra.gmra.mxu1 %vm497_vm1, %v1672_v49  ;;  %2458 = vmatmul.msk.f32.vlgmr.msrb.gmra.mxu2 %vm253_vm0, %v2455_v12 }
 0x671   : > { %2453 = vmatmul.msk.f32.vlgmr.msra.gmra.mxu3 %vm497_vm1, %v1674_v47  ;;  %1901 = vmatpush.msra.mxu1 %v2594_v11 }
 0x672   : > { %1941 = vmatpush.msra.mxu3 %v2873_v21  ;;  %2001 = vmatpush.msrb.mxu2 %v2927_v29 }
 0x673   : > { %1902 = vmatpush.msra.mxu1 %v2595_v15 }
 0x674   : > { %1942 = vmatpush.msra.mxu3 %v2889_v23  ;;  %2002 = vmatpush.msrb.mxu2 %v2934_v30 }
 0x675   : > { %1903 = vmatpush.msra.mxu1 %v2846_v17 }
 0x676   : > { %1943 = vmatpush.msra.mxu3 %v2901_v25  ;;  %2003 = vmatpush.msrb.mxu2 %v2943_v31 }
 0x677   : > { %1904 = vmatpush.msra.mxu1 %v2859_v19 }
 0x678   : > { %2457 = vmatmul.msk.f32.vlgmr.msrb.gmra.mxu1 %vm253_vm0, %v2455_v12  ;;  %2462 = vmatmul.msk.f32.vlgmr.msra.gmra.mxu2 %vm253_vm0, %v2455_v12 }
 0x679   : > { %2459 = vmatmul.msk.f32.vlgmr.msrb.gmra.mxu3 %vm253_vm0, %v2455_v12  ;;  %1981 = vmatpush.msrb.mxu1 %v2878_v22 }
 0x67a   : > { %1944 = vmatpush.msra.mxu3 %v2908_v26  ;;  %2004 = vmatpush.msrb.mxu2 %v2949_v32 }
 0x67b   : > { %1982 = vmatpush.msrb.mxu1 %v2894_v24 }
 0x67c   : > { %2021 = vmatpush.msrb.mxu3 %v2955_v33 }
 0x67d   : > { %1983 = vmatpush.msrb.mxu1 %v2917_v27 }
 0x67e   : > { %2022 = vmatpush.msrb.mxu3 %v2963_v34 }
 0x67f   : > { %1984 = vmatpush.msrb.mxu1 %v2922_v28 }
 0x680   : > { %2023 = vmatpush.msrb.mxu3 %v2969_v35  ;;  %2461 = vmatmul.msk.f32.vlgmr.msra.gmra.mxu1 %vm253_vm0, %v2455_v12 }
 0x681   : > { %2466 = vmatmul.msk.f32.vlgmr.msrb.gmra.mxu2 %vm253_vm0, %v2455_v12  ;;  %2463 = vmatmul.msk.f32.vlgmr.msra.gmra.mxu3 %vm253_vm0, %v2455_v12 }
 0x682   : > { %2024 = vmatpush.msrb.mxu3 %v2975_v36 }
 0x688   : > { %2465 = vmatmul.msk.f32.vlgmr.msrb.gmra.mxu1 %vm253_vm0, %v2455_v12 }
 0x689   : > { %2467 = vmatmul.msk.f32.vlgmr.msrb.gmra.mxu3 %vm253_vm0, %v2455_v12 }
 0x6d6   : > { %v1657_v17 = vpop.xlane.xlu2 %1656 }
 0x6d7   : > { %2576 = vrcp.f32 %v1657_v17 }
 0x6dd   : > { %v2577_v18 = vpop.eup %2576 }
 0x6de   : > { %v1671_v19 = vmul.f32 %v2577_v18, %v2569_v61 }
 0x6e0   : > { %2450 = vmatmul.msk.f32.vlgmr.msra.gmra.mxu0 %vm497_vm1, %v1671_v19 }
 0x6e1   : > { %1881 = vmatpush.msra.mxu0 %v3006_v41 }
 0x6e3   : > { %1882 = vmatpush.msra.mxu0 %v3014_v42 }
 0x6e5   : > { %1883 = vmatpush.msra.mxu0 %v3020_v44 }
 0x6e7   : > { %1884 = vmatpush.msra.mxu0 %v3026_v45 }
 0x6e8   : > { %2456 = vmatmul.msk.f32.vlgmr.msrb.gmra.mxu0 %vm253_vm0, %v2455_v12 }
 0x6e9   : > { %1961 = vmatpush.msrb.mxu0 %v3049_v54 }
 0x6eb   : > { %v3372_v20 = vpop.f32.mrf.mxu2  ;;  %1962 = vmatpush.msrb.mxu0 %v3057_v55 }
 0x6ed   : > { %v3375_v21 = vpop.f32.mrf.mxu1  ;;  %1963 = vmatpush.msrb.mxu0 %v3062_v56 }
 0x6ef   : > { %1964 = vmatpush.msrb.mxu0 %v3071_v58 }
 0x6f0   : > { %2460 = vmatmul.msk.f32.vlgmr.msra.gmra.mxu0 %vm253_vm0, %v2455_v12 }
 0x6f3   : > { %v1846_v22 = vpop.f32.mrf.mxu2 }
 0x6f4   : > { %v3380_v23 = vpop.f32.mrf.mxu3 }
 0x6f5   : > { %v1826_v24 = vpop.f32.mrf.mxu1 }
 0x6f8   : > { %2464 = vmatmul.msk.f32.vlgmr.msrb.gmra.mxu0 %vm253_vm0, %v2455_v12 }
 0x6fb   : > { %v1926_v25 = vpop.f32.mrf.mxu2 }
 0x6fc   : > { %v1866_v26 = vpop.f32.mrf.mxu3  ;;  %2472 = vmatpush.xpose.msk.msra.mxu2 %vm497_vm1, %v1926_v25  ;;  %v3521_v25 = vld [vmem:[#allocation9_spill] sm:$0xff] }
 0x6fd   : > { %v1906_v27 = vpop.f32.mrf.mxu1 }
 0x6fe   : > { %2470 = vmatpush.xpose.msk.msra.mxu1 %vm497_vm1, %v1906_v27 }
 0x6ff   : > { %2473 = vmatmul.msk.f32.vlgmr.msra.gmra.mxu2 %vm497_vm1, %v1846_v22 }
 0x701   : > { %2471 = vmatmul.msk.f32.vlgmr.msra.gmra.mxu1 %vm497_vm1, %v1826_v24 }
 0x704   : > { %v1946_v28 = vpop.f32.mrf.mxu3  ;;  %v2006_v30 = vpop.f32.mrf.mxu2 }
 0x705   : > { %2474 = vmatpush.xpose.msk.msra.mxu3 %vm497_vm1, %v1946_v28  ;;  %v1986_v29 = vpop.f32.mrf.mxu1  ;;  %2249 = vmatpush.msrb.mxu2 %v2006_v30 }
 0x706   : > { %2226 = vmatpush.msrb.mxu1 %v1986_v29 }
 0x708   : > { %2475 = vmatmul.msk.f32.vlgmr.msra.gmra.mxu3 %vm497_vm1, %v1866_v26 }
 0x70c   : > { %v2026_v32 = vpop.f32.mrf.mxu3 }
 0x70d   : > { %2272 = vmatpush.msrb.mxu3 %v2026_v32 }
 0x75d   : > { %v3389_v31 = vpop.f32.mrf.mxu0 }
 0x765   : > { %v1806_v33 = vpop.f32.mrf.mxu0 }
 0x76d   : > { %v1886_v34 = vpop.f32.mrf.mxu0 }
 0x76e   : > { %2468 = vmatpush.xpose.msk.msra.mxu0 %vm497_vm1, %v1886_v34 }
 0x771   : > { %2469 = vmatmul.msk.f32.vlgmr.msra.gmra.mxu0 %vm497_vm1, %v1806_v33 }
 0x775   : > { %v1966_v35 = vpop.f32.mrf.mxu0 }
 0x776   : > { %2203 = vmatpush.msrb.mxu0 %v1966_v35 }
 0x77e   : > { %v2078_v36 = vpop.f32.mrf.mxu1 }
 0x77f   : > { %v2134_v41 = vmul.f32 0.35355338, %v2078_v36 }
 0x781   : > { %v2138_v42 = vsel %vm3078_vm2, %v2134_v41, -1e+30 }
 0x782   : > { %v2104_v44 = vpop.f32.mrf.mxu2  ;;  %v2144_v45 = vsel %vm497_vm1, %v2138_v42, -inf }
 0x783   : > { %v2135_v54 = vmul.f32 0.35355338, %v2104_v44  ;;  %2145 = vmax.xlane.f32.xlu2 %v2144_v45 }
 0x785   : > { %v2139_v55 = vsel %vm3078_vm2, %v2135_v54, -1e+30 }
 0x786   : > { %v2147_v56 = vsel %vm497_vm1, %v2139_v55, -inf }
 0x787   : > { %2148 = vmax.xlane.f32.xlu0 %v2147_v56 }
 0x78b   : > { %v2130_v58 = vpop.f32.mrf.mxu3 }
 0x78c   : > { %v2136_v63 = vmul.f32 0.35355338, %v2130_v58 }
 0x78e   : > { %v2140_v38 = vsel %vm3078_vm2, %v2136_v63, -1e+30 }
 0x78f   : > { %v2150_v39 = vsel %vm497_vm1, %v2140_v38, -inf }
 0x790   : > { %2151 = vmax.xlane.f32.xlu1 %v2150_v39 }
 0x7ee   : > { %v2052_v62 = vpop.f32.mrf.mxu0 }
 0x7ef   : > { %v2133_v50 = vmul.f32 0.35355338, %v2052_v62 }
 0x7f1   : > { %v2137_v60 = vsel %vm3078_vm2, %v2133_v50, -1e+30 }
 0x7f2   : > { %v2141_v51 = vsel %vm497_vm1, %v2137_v60, -inf }
 0x7f3   : > { %2142 = vmax.xlane.f32.xlu0 %v2141_v51 }
 0x7f6   : > { %v2146_v2 = vpop.xlane.xlu2 %2145 }
 0x7f7   : > { %v2154_v1 = vsub.f32 %v2138_v42, %v2146_v2 }
 0x7f9   : > { %v2159_v3 = vmul.f32 1.442695, %v2154_v1 }
 0x7fa   : > { %v2149_v4 = vpop.xlane.xlu0 %2148 }
 0x7fb   : > { %2578 = vpow2.f32 %v2159_v3  ;;  %v2155_v5 = vsub.f32 %v2139_v55, %v2149_v4 }
 0x7fd   : > { %v2161_v8 = vmul.f32 1.442695, %v2155_v5 }
 0x7ff   : > { %2580 = vpow2.f32 %v2161_v8 }
 0x801   : > { %v2579_v6 = vpop.eup %2578 }
 0x802   : > { %v2168_v7 = vsel %vm497_vm1, %v2579_v6, 0.0 }
 0x803   : > { %v2152_v9 = vpop.xlane.xlu1 %2151  ;;  %2169 = vadd.xlane.f32.xlu0 %v2168_v7 }
 0x804   : > { %v2156_v13 = vsub.f32 %v2140_v38, %v2152_v9 }
 0x805   : > { %v2581_v16 = vpop.eup %2580 }
 0x806   : > { %v2163_v43 = vmul.f32 1.442695, %v2156_v13  ;;  %v2171_v61 = vsel %vm497_vm1, %v2581_v16, 0.0 }
 0x807   : > { %2172 = vadd.xlane.f32.xlu1 %v2171_v61 }
 0x808   : > { %2582 = vpow2.f32 %v2163_v43 }
 0x80e   : > { %v2583_v57 = vpop.eup %2582 }
 0x80f   : > { %v2174_v53 = vsel %vm497_vm1, %v2583_v57, 0.0 }
 0x810   : > { %2175 = vadd.xlane.f32.xlu2 %v2174_v53 }
 0x817   : > { %751 = vrot.lane.b32.xlu0 %v3518_v46, %s2660_s8 }
 0x81f   : > { %1262 = vrot.lane.b32.xlu0 %v3261_v59, %s2660_s8 }
 0x827   : > { %1772 = vrot.lane.b32.xlu0 %v3372_v20, %s2660_s8 }
 0x828   : > { %747 = vrot.lane.b32.xlu2 %v3519_v37, %s2661_s10 }
 0x830   : > { %1258 = vrot.lane.b32.xlu2 %v3265_v40, %s2661_s10 }
 0x838   : > { %1266 = vrot.lane.b32.xlu2 %v3270_v48, %s2662_s11 }
 0x840   : > { %1776 = vrot.lane.b32.xlu2 %v3380_v23, %s2662_s11  ;;  %v3520_v23 = vld [vmem:[#allocation10_spill] sm:$0xff] }
 0x866   : > { %v2143_v10 = vpop.xlane.xlu0 %2142 }
 0x867   : > { %v2153_v14 = vsub.f32 %v2137_v60, %v2143_v10 }
 0x869   : > { %v2157_v59 = vmul.f32 1.442695, %v2153_v14 }
 0x86b   : > { %2584 = vpow2.f32 %v2157_v59 }
 0x871   : > { %v2585_v12 = vpop.eup %2584 }
 0x872   : > { %v2165_v52 = vsel %vm497_vm1, %v2585_v12, 0.0 }
 0x873   : > { %2166 = vadd.xlane.f32.xlu1 %v2165_v52 }
 0x876   : > { %v2170_v49 = vpop.xlane.xlu0 %2169 }
 0x877   : > { %2586 = vrcp.f32 %v2170_v49 }
 0x87a   : > { %v2173_v47 = vpop.xlane.xlu1 %2172 }
 0x87b   : > { %2588 = vrcp.f32 %v2173_v47 }
 0x87d   : > { %v2587_v40 = vpop.eup %2586 }
 0x87e   : > { %v2182_v11 = vmul.f32 %v2587_v40, %v2579_v6 }
 0x880   : > { %2477 = vmatmul.msk.f32.vlgmr.msrb.gmra.mxu1 %vm497_vm1, %v2182_v11 }
 0x881   : > { %v2589_v48 = vpop.eup %2588 }
 0x882   : > { %v2183_v15 = vmul.f32 %v2589_v48, %v2581_v16 }
 0x883   : > { %v2176_v17 = vpop.xlane.xlu2 %2175 }
 0x884   : > { %2590 = vrcp.f32 %v2176_v17  ;;  %2478 = vmatmul.msk.f32.vlgmr.msrb.gmra.mxu2 %vm497_vm1, %v2183_v15 }
 0x889   : > { %v752_v22 = vpop.permute.xlu0 %751 }
 0x88a   : > { %v2591_v18 = vpop.eup %2590 }
 0x88b   : > { %v2184_v19 = vmul.f32 %v2591_v18, %v2583_v57  ;;  %v748_v20 = vpop.permute.xlu2 %747 }
 0x88c   : > { %v758_v24 = vsel %vm497_vm1, %v3520_v23, %v748_v20  ;;  %755 = vrot.lane.b32.xlu1 %v3521_v25, %s2662_s11 }
 0x88d   : > { %2479 = vmatmul.msk.f32.vlgmr.msrb.gmra.mxu3 %vm497_vm1, %v2184_v19  ;;  %v760_v26 = vsel %vm759_vm3, %v758_v24, %v752_v22 }
 0x891   : > { %v1263_v29 = vpop.permute.xlu0 %1262 }
 0x893   : > { %v1259_v27 = vpop.permute.xlu2 %1258 }
 0x894   : > { %1768 = vrot.lane.b32.xlu1 %v3375_v21, %s2661_s10  ;;  %v1269_v28 = vsel %vm497_vm1, %v3299_v0, %v1259_v27 }
 0x895   : > { %v1270_v30 = vsel %vm759_vm3, %v1269_v28, %v1263_v29 }
 0x899   : > { %v1773_v44 = vpop.permute.xlu0 %1772 }
 0x89b   : > { %v1267_v32 = vpop.permute.xlu2 %1266 }
 0x89c   : > { %v1271_v33 = vsel %vm761_vm4, %v1270_v30, %v1267_v32 }
 0x89d   : > { %2428 = vst.msk [vmem:[%s3440_s7 + $0x8] sm:$0xff] %vm253_vm0, %v1271_v33 }
 0x8a3   : > { %v1777_v55 = vpop.permute.xlu2 %1776 }
 0x8e6   : > { %v2167_v21 = vpop.xlane.xlu1 %2166 }
 0x8e7   : > { %2592 = vrcp.f32 %v2167_v21 }
 0x8ed   : > { %v2593_v34 = vpop.eup %2592 }
 0x8ee   : > { %v2181_v35 = vmul.f32 %v2593_v34, %v2585_v12 }
 0x8f0   : > { %2476 = vmatmul.msk.f32.vlgmr.msrb.gmra.mxu0 %vm497_vm1, %v2181_v35 }
 0x8fd   : > { %v2228_v0 = vpop.f32.mrf.mxu1 }
 0x8fe   : > { %v756_v36 = vpop.permute.xlu1 %755  ;;  %2278 = vrot.lane.b32.xlu1 %v2228_v0, %s2661_s10 }
 0x8ff   : > { %v762_v41 = vsel %vm761_vm4, %v760_v26, %v756_v36 }
 0x900   : > { %763 = vst.msk [vmem:[%s3440_s7] sm:$0xff] %vm253_vm0, %v762_v41 }
 0x906   : > { %v1769_v42 = vpop.permute.xlu1 %1768 }
 0x907   : > { %v1779_v45 = vsel %vm497_vm1, %v3389_v31, %v1769_v42  ;;  %v2251_v54 = vpop.f32.mrf.mxu2 }
 0x908   : > { %v1780_v56 = vsel %vm759_vm3, %v1779_v45, %v1773_v44  ;;  %2282 = vrot.lane.b32.xlu0 %v2251_v54, %s2660_s8 }
 0x909   : > { %v1781_v58 = vsel %vm761_vm4, %v1780_v56, %v1777_v55 }
 0x90a   : > { %2454 = vst.msk [vmem:[%s3440_s7 + $0x10] sm:$0xff] %vm253_vm0, %v1781_v58 }
 0x910   : > { %v2274_v63 = vpop.f32.mrf.mxu3 }
 0x911   : > { %2286 = vrot.lane.b32.xlu2 %v2274_v63, %s2662_s11 }
 0x96b   : > { %v2287_v50 = vpop.permute.xlu2 %2286 }
 0x96d   : > { %v2205_v38 = vpop.f32.mrf.mxu0 }
 0x970   : > { %v2279_v31 = vpop.permute.xlu1 %2278 }
 0x971   : > { %v2289_v39 = vsel %vm497_vm1, %v2205_v38, %v2279_v31 }
 0x97a   : > { %v2283_v62 = vpop.permute.xlu0 %2282 }
 0x97b   : > { %v2290_v60 = vsel %vm759_vm3, %v2289_v39, %v2283_v62 }
 0x97c   : > { %v2291_v51 = vsel %vm761_vm4, %v2290_v60, %v2287_v50 }
 0x97d   : > { %2480 = vst.msk [vmem:[%s3440_s7 + $0x18] sm:$0xff] %vm253_vm0, %v2291_v51 }
 0x97e   : > { %2623 = shalt.err (!%p2620_p3)
}
 0x97f   : > { %s2663_s12 = smov 128  }
 0x980   : > { %2487 = dma.vmem_to_hbm [thread:$0]  (%p2727_p5), %s2308_s27, 512, %s2310_s28, %s2295_s19, %s2663_s12, %s2663_s12, %s2661_s10  }
 0x981 PF: > { %p2493_p4 = scmp.ge.s32.totalorder %s2658_s18, 2  ;;  %s2324_s13 = sand.u32 1, %s2646_s15  }
 0x982   : > { %s2325_s7 = scalar_lea.sflag [#allocation3], %s2324_s13 }
 0x983   : > { %p2490_p7 = pnand %p2493_p4, %p2731_p6 }
 0x985   : > { %p2491_p8 = pneg %p2490_p7 }
 0x987   : > { %2641 = dma.done.wait (%p2491_p8), %s2325_s7, 512  }
 0x988   : > { %2643 = vsyncadd (%p2491_p8), %s2325_s7, 4294966784  ;;  %p14_p9 = scmp.ge.s32.totalorder %s2714_s21, 6   ;;  %s3522_s15 = smov %s2650_s16 }
 0x989   : > { %s3523_s16 = smov %s2654_s17  ;;  %s3524_s17 = smov %s2725_s24 }
 0x98a   : > { %s3525_s18 = smov %s2714_s21  ;;  %16 = sbr.rel (!%p14_p9) target bundleno = 3 (0x3), region = 77 }
 0x98f   :  { %2331 = vsyncpa [#allocation3], 1 }
 0x990   :  { %2333 = vsyncpa [#allocation3 + $0x1], 1 }

</bundles_post_ra>
